<compile_context>
chip_gen: v7x
topology: tpu7x:2x2x1
jax: 0.10.0
libtpu: 0.0.40
codegen_flags: <defaults>
</compile_context>

<pallas_src>
import functools

import jax
import jax.numpy as jnp
from jax.experimental import pallas as pl
from jax.experimental.pallas import tpu as pltpu

INPUT_SIZE = 8
HIDDEN_SIZE = 10
NUM_LAYERS = 1

BP = 8            # padded batch  (sublane multiple)
HP = 128          # padded hidden (one 128-lane block; real h/c in lanes [0:10))
IP = 128          # padded input  (lane multiple)
GP = 128          # lanes per gate block
HALF = GP // 2    # 64: offset of the 2nd gate inside each block
NG = 2 * GP       # gate matmul N: two 128-lane blocks  [ i | f ]  and  [ g | o ]
T_CHUNK_MAX = 32  # time steps per grid step (bounds VMEM / enables pipelining for long T)

# Column offsets of the PyTorch gates (i, f, g, o) inside the packed (., NG) weights:
#   block A (lanes [  0,128)): i at [0:H),      f at [64:64+H)
#   block B (lanes [128,256)): g at [128:128+H), o at [192:192+H)
_COL_OFF = (0, HALF, GP, GP + HALF)


def _lstm_kernel(x_ref, wih_ref, whh_ref, b_ref, out_ref, cn_ref,
                 xp_ref, h_ref, c_ref, *, t_valid, needs_tail_mask):
    """x_ref: (TC, BP, IP); wih_ref: (IP, NG); whh_ref: (HP, NG); b_ref: (1, NG);
       out_ref: (TC, BP, HP); cn_ref: (1, BP, HP);
       xp_ref: (TC, BP, NG) scratch; h_ref/c_ref: (BP, HP) state carried across chunks."""
    chunk = pl.program_id(0)
    tc = x_ref.shape[0]

    @pl.when(chunk == 0)
    def _init_state():
        h_ref[...] = jnp.zeros_like(h_ref)
        c_ref[...] = jnp.zeros_like(c_ref)

    # Input projection for the whole chunk as ONE throughput-bound GEMM (bias folded in),
    # off the serial recurrence path.
    x2d = x_ref[...].reshape(tc * BP, IP)
    xp = jnp.dot(x2d, wih_ref[...], preferred_element_type=jnp.float32) + b_ref[...]
    xp_ref[...] = xp.reshape(tc, BP, NG)

    w_hh = whh_ref[...]                                    # (HP, NG), resident for the chunk
    # Hoisted constants (JAX does not CSE broadcasts/iotas inside the unrolled loop).
    lane = jax.lax.broadcasted_iota(jnp.int32, (BP, GP), 1)
    o_half = lane >= HALF                                  # sigmoid (o) lanes of block B

    def step(t, carry):
        h_prev, c_prev = carry                             # (BP, HP) each, live in vregs
        # Only the recurrent projection stays on the serial path: (8,128) @ (128,256).
        z = xp_ref[t] + jnp.dot(h_prev, w_hh, preferred_element_type=jnp.float32)
        z_a = z[:, :GP]                                    # [ i | f ] pre-activations
        z_b = z[:, GP:]                                    # [ g | o ] pre-activations
        # sigmoid(x) = 0.5*(1 + tanh(0.5*x)) -> one EUP tanh per 128-lane block.
        act_a = 0.5 * (jnp.tanh(0.5 * z_a) + 1.0)          # i | f   (both sigmoid)
        t_b = jnp.tanh(jnp.where(o_half, 0.5 * z_b, z_b))
        act_b = jnp.where(o_half, 0.5 * (t_b + 1.0), t_b)  # g (tanh) | o (sigmoid)
        # Cross-lane alignment: only half-block (64-lane) rotations on the XLU.
        ig = act_a * act_b                                 # i*g at lanes [0:H)
        fc = act_a * pltpu.roll(c_prev, HALF, axis=1)      # f*c at lanes [64:64+H)
        c_new = ig + pltpu.roll(fc, HALF, axis=1)          # i*g + f*c at lanes [0:H)
        h_new = pltpu.roll(act_b, HALF, axis=1) * jnp.tanh(c_new)  # o*tanh(c) at [0:H)
        out_ref[t] = h_new
        if needs_tail_mask:                                # only traced when chunk padding exists
            keep = (chunk * tc + t) < t_valid
            h_new = jnp.where(keep, h_new, h_prev)
            c_new = jnp.where(keep, c_new, c_prev)
        return h_new, c_new

    h_f, c_f = jax.lax.fori_loop(0, tc, step, (h_ref[...], c_ref[...]),
                                 unroll=min(tc, 8))
    h_ref[...] = h_f
    c_ref[...] = c_f
    cn_ref[0] = c_f


def _pack_gate_matrix(w, rows_padded):
    """PyTorch (4H, K) gate-stacked weight -> (rows_padded, NG) transposed, zero-padded."""
    h = HIDDEN_SIZE
    k = w.shape[1]
    out = jnp.zeros((rows_padded, NG), jnp.float32)
    for g in range(4):
        out = out.at[:k, _COL_OFF[g]:_COL_OFF[g] + h].set(
            w[g * h:(g + 1) * h, :].T.astype(jnp.float32))
    return out


def _pack_bias(b_ih, b_hh):
    h = HIDDEN_SIZE
    b = (b_ih + b_hh).astype(jnp.float32)
    out = jnp.zeros((1, NG), jnp.float32)
    for g in range(4):
        out = out.at[0, _COL_OFF[g]:_COL_OFF[g] + h].set(b[g * h:(g + 1) * h])
    return out


def lstm_forward(x, w_ih, w_hh, b_ih, b_hh):
    """Equivalent of net_LSTM.forward: returns (output, (h_n, c_n)) with zero initial state."""
    T, B, I = x.shape
    H = HIDDEN_SIZE
    assert I == INPUT_SIZE and B <= BP and 4 * H <= NG

    tc = min(T, T_CHUNK_MAX)
    n_chunks = pl.cdiv(T, tc)
    t_pad = n_chunks * tc

    x_p = jnp.zeros((t_pad, BP, IP), jnp.float32).at[:T, :B, :I].set(x.astype(jnp.float32))
    wih_p = _pack_gate_matrix(w_ih, IP)   # (IP, NG)
    whh_p = _pack_gate_matrix(w_hh, HP)   # (HP, NG)
    b_p = _pack_bias(b_ih, b_hh)          # (1, NG)

    kernel = functools.partial(_lstm_kernel, t_valid=T, needs_tail_mask=(t_pad != T))

    out_p, cn_p = pl.pallas_call(
        kernel,
        out_shape=(
            jax.ShapeDtypeStruct((t_pad, BP, HP), jnp.float32),
            jax.ShapeDtypeStruct((1, BP, HP), jnp.float32),
        ),
        grid_spec=pltpu.PrefetchScalarGridSpec(
            num_scalar_prefetch=0,
            grid=(n_chunks,),
            in_specs=[
                pl.BlockSpec((tc, BP, IP), lambda t: (t, 0, 0)),   # x, chunked over time
                pl.BlockSpec((IP, NG), lambda t: (0, 0)),          # packed W_ih^T (resident)
                pl.BlockSpec((HP, NG), lambda t: (0, 0)),          # packed W_hh^T (resident)
                pl.BlockSpec((1, NG), lambda t: (0, 0)),           # packed bias   (resident)
            ],
            out_specs=[
                pl.BlockSpec((tc, BP, HP), lambda t: (t, 0, 0)),   # h sequence
                pl.BlockSpec((1, BP, HP), lambda t: (0, 0, 0)),    # c_n (resident)
            ],
            scratch_shapes=[
                pltpu.VMEM((tc, BP, NG), jnp.float32),   # per-chunk input projection
                pltpu.VMEM((BP, HP), jnp.float32),       # h state carried across chunks
                pltpu.VMEM((BP, HP), jnp.float32),       # c state carried across chunks
            ],
        ),
        compiler_params=pltpu.CompilerParams(
            dimension_semantics=("arbitrary",),          # recurrence: chunks are sequential
        ),
    )(x_p, wih_p, whh_p, b_p)

    output = out_p[:T, :B, :H]                           # (T, B, H)
    h_n = output[T - 1:T, :, :]                          # (num_layers=1, B, H) == last output
    c_n = cn_p[:, :B, :H]                                # (num_layers=1, B, H)
    return output, (h_n, c_n)


def lstm_ref(x, w_ih, w_hh, b_ih, b_hh):
    """Plain-JAX reference matching PyTorch nn.LSTM semantics (zero initial state)."""
    T, B, _ = x.shape
    H = HIDDEN_SIZE
    h = jnp.zeros((B, H), jnp.float32)
    c = jnp.zeros((B, H), jnp.float32)
    outs = []
    for t in range(T):
        gates = x[t] @ w_ih.T + h @ w_hh.T + b_ih + b_hh
        i = jax.nn.sigmoid(gates[:, 0 * H:1 * H])
        f = jax.nn.sigmoid(gates[:, 1 * H:2 * H])
        g = jnp.tanh(gates[:, 2 * H:3 * H])
        o = jax.nn.sigmoid(gates[:, 3 * H:4 * H])
        c = f * c + i * g
        h = o * jnp.tanh(c)
        outs.append(h)
    return jnp.stack(outs), (h[None], c[None])


if __name__ == "__main__":
    key = jax.random.PRNGKey(0)
    k_x, k_wih, k_whh, k_bih, k_bhh = jax.random.split(key, 5)

    T, B = 8, 2
    H, I = HIDDEN_SIZE, INPUT_SIZE
    scale = 1.0 / jnp.sqrt(jnp.float32(H))   # PyTorch-style uniform(-1/sqrt(H), 1/sqrt(H))

    x = jax.random.normal(k_x, (T, B, I), jnp.float32)
    w_ih = jax.random.uniform(k_wih, (4 * H, I), jnp.float32, -scale, scale)
    w_hh = jax.random.uniform(k_whh, (4 * H, H), jnp.float32, -scale, scale)
    b_ih = jax.random.uniform(k_bih, (4 * H,), jnp.float32, -scale, scale)
    b_hh = jax.random.uniform(k_bhh, (4 * H,), jnp.float32, -scale, scale)

    output, (h_n, c_n) = jax.block_until_ready(
        jax.jit(lstm_forward)(x, w_ih, w_hh, b_ih, b_hh))

    ref_out, (ref_h, ref_c) = lstm_ref(x, w_ih, w_hh, b_ih, b_hh)

    assert output.shape == (T, B, H)
    assert h_n.shape == (NUM_LAYERS, B, H) and c_n.shape == (NUM_LAYERS, B, H)
    assert jnp.allclose(output, ref_out, atol=1e-5, rtol=1e-5)
    assert jnp.allclose(h_n, ref_h, atol=1e-5, rtol=1e-5)
    assert jnp.allclose(c_n, ref_c, atol=1e-5, rtol=1e-5)

    print("KERNEL_OK")
</pallas_src>

<mosaic_0001>
module attributes {stable_mosaic.version = 11 : i64} {
  func.func @_lstm_kernel(%arg0: i32, %arg1: memref<8x8x128xf32, #tpu.memory_space<vmem>>, %arg2: memref<128x256xf32, #tpu.memory_space<vmem>>, %arg3: memref<128x256xf32, #tpu.memory_space<vmem>>, %arg4: memref<1x256xf32, #tpu.memory_space<vmem>>, %arg5: memref<8x8x128xf32, #tpu.memory_space<vmem>>, %arg6: memref<1x8x128xf32, #tpu.memory_space<vmem>>, %arg7: memref<8x8x256xf32, #tpu.memory_space<vmem>>, %arg8: memref<8x128xf32, #tpu.memory_space<vmem>>, %arg9: memref<8x128xf32, #tpu.memory_space<vmem>>) attributes {dimension_semantics = [#tpu.dimension_semantics<arbitrary>], iteration_bounds = array<i64: 1>, scalar_prefetch = 0 : i64, scratch_operands = 3 : i64, tpu.core_type = #tpu.core_type<tc>, window_params = [{transform_indices = @transform_0, window_bounds = array<i64: 8, 8, 128>}, {pipeline_mode = #tpu.pipeline_mode<synchronous>, transform_indices = @transform_1, window_bounds = array<i64: 128, 256>}, {pipeline_mode = #tpu.pipeline_mode<synchronous>, transform_indices = @transform_2, window_bounds = array<i64: 128, 256>}, {pipeline_mode = #tpu.pipeline_mode<synchronous>, transform_indices = @transform_3, window_bounds = array<i64: 1, 256>}, {transform_indices = @transform_4, window_bounds = array<i64: 8, 8, 128>}, {pipeline_mode = #tpu.pipeline_mode<synchronous>, transform_indices = @transform_5, window_bounds = array<i64: 1, 8, 128>}]} {
    %c0_i32 = arith.constant 0 : i32
    %0 = arith.cmpi eq, %arg0, %c0_i32 : i32
    %1 = arith.extui %0 : i1 to i32
    %c0_i32_0 = arith.constant 0 : i32
    %2 = arith.cmpi ne, %1, %c0_i32_0 : i32
    scf.if %2 {
      %cst_136 = arith.constant 0.000000e+00 : f32
      %303 = vector.broadcast %cst_136 : f32 to vector<8x128xf32>
      %c0_137 = arith.constant 0 : index
      %c0_138 = arith.constant 0 : index
      %304 = vector.load %arg8[%c0_137, %c0_138] : memref<8x128xf32, #tpu.memory_space<vmem>>, vector<8x128xf32>
      tpu.vector_store %arg8[%c0_137, %c0_138], %303 {strides = array<i32>} : memref<8x128xf32, #tpu.memory_space<vmem>>, vector<8x128xf32>,
      %cst_139 = arith.constant 0.000000e+00 : f32
      %305 = vector.broadcast %cst_139 : f32 to vector<8x128xf32>
      %c0_140 = arith.constant 0 : index
      %c0_141 = arith.constant 0 : index
      %306 = vector.load %arg9[%c0_140, %c0_141] : memref<8x128xf32, #tpu.memory_space<vmem>>, vector<8x128xf32>
      tpu.vector_store %arg9[%c0_140, %c0_141], %305 {strides = array<i32>} : memref<8x128xf32, #tpu.memory_space<vmem>>, vector<8x128xf32>,
    } else {
    }
    %c0 = arith.constant 0 : index
    %c0_1 = arith.constant 0 : index
    %c0_2 = arith.constant 0 : index
    %3 = vector.load %arg1[%c0, %c0_1, %c0_2] : memref<8x8x128xf32, #tpu.memory_space<vmem>>, vector<8x8x128xf32>
    %4 = vector.shape_cast %3 : vector<8x8x128xf32> to vector<64x128xf32>
    %c0_3 = arith.constant 0 : index
    %c0_4 = arith.constant 0 : index
    %5 = vector.load %arg2[%c0_3, %c0_4] : memref<128x256xf32, #tpu.memory_space<vmem>>, vector<128x256xf32>
    %cst = arith.constant dense<0.000000e+00> : vector<64x256xf32>
    %6 = tpu.matmul %4, %5, %cst {dimension_numbers = #tpu.dot_dimension_numbers<[1], [0], [0], [1], [0, 0, 1, 1], [], []>} : vector<64x128xf32>, vector<128x256xf32>, vector<64x256xf32> -> vector<64x256xf32>
    %c0_5 = arith.constant 0 : index
    %c0_6 = arith.constant 0 : index
    %7 = vector.load %arg4[%c0_5, %c0_6] : memref<1x256xf32, #tpu.memory_space<vmem>>, vector<1x256xf32>
    %8 = vector.broadcast %7 : vector<1x256xf32> to vector<64x256xf32>
    %9 = arith.addf %6, %8 : vector<64x256xf32>
    %10 = vector.shape_cast %9 : vector<64x256xf32> to vector<8x8x256xf32>
    %c0_7 = arith.constant 0 : index
    %c0_8 = arith.constant 0 : index
    %c0_9 = arith.constant 0 : index
    %11 = vector.load %arg7[%c0_7, %c0_8, %c0_9] : memref<8x8x256xf32, #tpu.memory_space<vmem>>, vector<8x8x256xf32>
    tpu.vector_store %arg7[%c0_7, %c0_8, %c0_9], %10 {strides = array<i32>} : memref<8x8x256xf32, #tpu.memory_space<vmem>>, vector<8x8x256xf32>,
    %c0_10 = arith.constant 0 : index
    %c0_11 = arith.constant 0 : index
    %12 = vector.load %arg3[%c0_10, %c0_11] : memref<128x256xf32, #tpu.memory_space<vmem>>, vector<128x256xf32>
    %13 = tpu.iota {dimensions = array<i32: 1>} : vector<8x128xi32>
    %c64_i32 = arith.constant 64 : i32
    %14 = vector.broadcast %c64_i32 : i32 to vector<8x128xi32>
    %15 = arith.cmpi sge, %13, %14 : vector<8x128xi32>
    %c0_12 = arith.constant 0 : index
    %c0_13 = arith.constant 0 : index
    %16 = vector.load %arg8[%c0_12, %c0_13] : memref<8x128xf32, #tpu.memory_space<vmem>>, vector<8x128xf32>
    %c0_14 = arith.constant 0 : index
    %c0_15 = arith.constant 0 : index
    %17 = vector.load %arg9[%c0_14, %c0_15] : memref<8x128xf32, #tpu.memory_space<vmem>>, vector<8x128xf32>
    %c0_i32_16 = arith.constant 0 : i32
    %18 = arith.index_cast %c0_i32_16 : i32 to index
    %c0_17 = arith.constant 0 : index
    %c0_18 = arith.constant 0 : index
    %19 = vector.load %arg7[%18, %c0_17, %c0_18] : memref<8x8x256xf32, #tpu.memory_space<vmem>>, vector<1x8x256xf32>
    %20 = vector.shape_cast %19 : vector<1x8x256xf32> to vector<8x256xf32>
    %cst_19 = arith.constant dense<0.000000e+00> : vector<8x256xf32>
    %21 = tpu.matmul %16, %12, %cst_19 {dimension_numbers = #tpu.dot_dimension_numbers<[1], [0], [0], [1], [0, 0, 1, 1], [], []>} : vector<8x128xf32>, vector<128x256xf32>, vector<8x256xf32> -> vector<8x256xf32>
    %22 = arith.addf %20, %21 : vector<8x256xf32>
    %23 = vector.extract_strided_slice %22 {offsets = [0, 0], sizes = [8, 128], strides = [1, 1]} : vector<8x256xf32> to vector<8x128xf32>
    %24 = vector.extract_strided_slice %22 {offsets = [0, 128], sizes = [8, 128], strides = [1, 1]} : vector<8x256xf32> to vector<8x128xf32>
    %cst_20 = arith.constant 5.000000e-01 : f32
    %25 = vector.broadcast %cst_20 : f32 to vector<8x128xf32>
    %26 = arith.mulf %25, %23 : vector<8x128xf32>
    %27 = math.tanh %26 : vector<8x128xf32>
    %cst_21 = arith.constant 1.000000e+00 : f32
    %28 = vector.broadcast %cst_21 : f32 to vector<8x128xf32>
    %29 = arith.addf %27, %28 : vector<8x128xf32>
    %cst_22 = arith.constant 5.000000e-01 : f32
    %30 = vector.broadcast %cst_22 : f32 to vector<8x128xf32>
    %31 = arith.mulf %30, %29 : vector<8x128xf32>
    %cst_23 = arith.constant 5.000000e-01 : f32
    %32 = vector.broadcast %cst_23 : f32 to vector<8x128xf32>
    %33 = arith.mulf %32, %24 : vector<8x128xf32>
    %34 = arith.select %15, %33, %24 : vector<8x128xi1>, vector<8x128xf32>
    %35 = math.tanh %34 : vector<8x128xf32>
    %cst_24 = arith.constant 1.000000e+00 : f32
    %36 = vector.broadcast %cst_24 : f32 to vector<8x128xf32>
    %37 = arith.addf %35, %36 : vector<8x128xf32>
    %cst_25 = arith.constant 5.000000e-01 : f32
    %38 = vector.broadcast %cst_25 : f32 to vector<8x128xf32>
    %39 = arith.mulf %38, %37 : vector<8x128xf32>
    %40 = arith.select %15, %39, %35 : vector<8x128xi1>, vector<8x128xf32>
    %41 = arith.mulf %31, %40 : vector<8x128xf32>
    %c64_i32_26 = arith.constant 64 : i32
    %42 = tpu.dynamic_rotate %17 by %c64_i32_26 dim 1 : vector<8x128xf32>, i32 -> vector<8x128xf32>
    %43 = arith.mulf %31, %42 : vector<8x128xf32>
    %c64_i32_27 = arith.constant 64 : i32
    %44 = tpu.dynamic_rotate %43 by %c64_i32_27 dim 1 : vector<8x128xf32>, i32 -> vector<8x128xf32>
    %45 = arith.addf %41, %44 : vector<8x128xf32>
    %c64_i32_28 = arith.constant 64 : i32
    %46 = tpu.dynamic_rotate %40 by %c64_i32_28 dim 1 : vector<8x128xf32>, i32 -> vector<8x128xf32>
    %47 = math.tanh %45 : vector<8x128xf32>
    %48 = arith.mulf %46, %47 : vector<8x128xf32>
    %49 = arith.index_cast %c0_i32_16 : i32 to index
    %c0_29 = arith.constant 0 : index
    %c0_30 = arith.constant 0 : index
    %50 = vector.load %arg5[%49, %c0_29, %c0_30] : memref<8x8x128xf32, #tpu.memory_space<vmem>>, vector<1x8x128xf32>
    %51 = vector.shape_cast %50 : vector<1x8x128xf32> to vector<8x128xf32>
    %52 = vector.shape_cast %48 : vector<8x128xf32> to vector<1x8x128xf32>
    tpu.vector_store %arg5[%49, %c0_29, %c0_30], %52 {strides = array<i32>} : memref<8x8x128xf32, #tpu.memory_space<vmem>>, vector<1x8x128xf32>,
    %c1_i32 = arith.constant 1 : i32
    %53 = arith.index_cast %c1_i32 : i32 to index
    %c0_31 = arith.constant 0 : index
    %c0_32 = arith.constant 0 : index
    %54 = vector.load %arg7[%53, %c0_31, %c0_32] : memref<8x8x256xf32, #tpu.memory_space<vmem>>, vector<1x8x256xf32>
    %55 = vector.shape_cast %54 : vector<1x8x256xf32> to vector<8x256xf32>
    %cst_33 = arith.constant dense<0.000000e+00> : vector<8x256xf32>
    %56 = tpu.matmul %48, %12, %cst_33 {dimension_numbers = #tpu.dot_dimension_numbers<[1], [0], [0], [1], [0, 0, 1, 1], [], []>} : vector<8x128xf32>, vector<128x256xf32>, vector<8x256xf32> -> vector<8x256xf32>
    %57 = arith.addf %55, %56 : vector<8x256xf32>
    %58 = vector.extract_strided_slice %57 {offsets = [0, 0], sizes = [8, 128], strides = [1, 1]} : vector<8x256xf32> to vector<8x128xf32>
    %59 = vector.extract_strided_slice %57 {offsets = [0, 128], sizes = [8, 128], strides = [1, 1]} : vector<8x256xf32> to vector<8x128xf32>
    %cst_34 = arith.constant 5.000000e-01 : f32
    %60 = vector.broadcast %cst_34 : f32 to vector<8x128xf32>
    %61 = arith.mulf %60, %58 : vector<8x128xf32>
    %62 = math.tanh %61 : vector<8x128xf32>
    %cst_35 = arith.constant 1.000000e+00 : f32
    %63 = vector.broadcast %cst_35 : f32 to vector<8x128xf32>
    %64 = arith.addf %62, %63 : vector<8x128xf32>
    %cst_36 = arith.constant 5.000000e-01 : f32
    %65 = vector.broadcast %cst_36 : f32 to vector<8x128xf32>
    %66 = arith.mulf %65, %64 : vector<8x128xf32>
    %cst_37 = arith.constant 5.000000e-01 : f32
    %67 = vector.broadcast %cst_37 : f32 to vector<8x128xf32>
    %68 = arith.mulf %67, %59 : vector<8x128xf32>
    %69 = arith.select %15, %68, %59 : vector<8x128xi1>, vector<8x128xf32>
    %70 = math.tanh %69 : vector<8x128xf32>
    %cst_38 = arith.constant 1.000000e+00 : f32
    %71 = vector.broadcast %cst_38 : f32 to vector<8x128xf32>
    %72 = arith.addf %70, %71 : vector<8x128xf32>
    %cst_39 = arith.constant 5.000000e-01 : f32
    %73 = vector.broadcast %cst_39 : f32 to vector<8x128xf32>
    %74 = arith.mulf %73, %72 : vector<8x128xf32>
    %75 = arith.select %15, %74, %70 : vector<8x128xi1>, vector<8x128xf32>
    %76 = arith.mulf %66, %75 : vector<8x128xf32>
    %c64_i32_40 = arith.constant 64 : i32
    %77 = tpu.dynamic_rotate %45 by %c64_i32_40 dim 1 : vector<8x128xf32>, i32 -> vector<8x128xf32>
    %78 = arith.mulf %66, %77 : vector<8x128xf32>
    %c64_i32_41 = arith.constant 64 : i32
    %79 = tpu.dynamic_rotate %78 by %c64_i32_41 dim 1 : vector<8x128xf32>, i32 -> vector<8x128xf32>
    %80 = arith.addf %76, %79 : vector<8x128xf32>
    %c64_i32_42 = arith.constant 64 : i32
    %81 = tpu.dynamic_rotate %75 by %c64_i32_42 dim 1 : vector<8x128xf32>, i32 -> vector<8x128xf32>
    %82 = math.tanh %80 : vector<8x128xf32>
    %83 = arith.mulf %81, %82 : vector<8x128xf32>
    %84 = arith.index_cast %c1_i32 : i32 to index
    %c0_43 = arith.constant 0 : index
    %c0_44 = arith.constant 0 : index
    %85 = vector.load %arg5[%84, %c0_43, %c0_44] : memref<8x8x128xf32, #tpu.memory_space<vmem>>, vector<1x8x128xf32>
    %86 = vector.shape_cast %85 : vector<1x8x128xf32> to vector<8x128xf32>
    %87 = vector.shape_cast %83 : vector<8x128xf32> to vector<1x8x128xf32>
    tpu.vector_store %arg5[%84, %c0_43, %c0_44], %87 {strides = array<i32>} : memref<8x8x128xf32, #tpu.memory_space<vmem>>, vector<1x8x128xf32>,
    %c2_i32 = arith.constant 2 : i32
    %88 = arith.index_cast %c2_i32 : i32 to index
    %c0_45 = arith.constant 0 : index
    %c0_46 = arith.constant 0 : index
    %89 = vector.load %arg7[%88, %c0_45, %c0_46] : memref<8x8x256xf32, #tpu.memory_space<vmem>>, vector<1x8x256xf32>
    %90 = vector.shape_cast %89 : vector<1x8x256xf32> to vector<8x256xf32>
    %cst_47 = arith.constant dense<0.000000e+00> : vector<8x256xf32>
    %91 = tpu.matmul %83, %12, %cst_47 {dimension_numbers = #tpu.dot_dimension_numbers<[1], [0], [0], [1], [0, 0, 1, 1], [], []>} : vector<8x128xf32>, vector<128x256xf32>, vector<8x256xf32> -> vector<8x256xf32>
    %92 = arith.addf %90, %91 : vector<8x256xf32>
    %93 = vector.extract_strided_slice %92 {offsets = [0, 0], sizes = [8, 128], strides = [1, 1]} : vector<8x256xf32> to vector<8x128xf32>
    %94 = vector.extract_strided_slice %92 {offsets = [0, 128], sizes = [8, 128], strides = [1, 1]} : vector<8x256xf32> to vector<8x128xf32>
    %cst_48 = arith.constant 5.000000e-01 : f32
    %95 = vector.broadcast %cst_48 : f32 to vector<8x128xf32>
    %96 = arith.mulf %95, %93 : vector<8x128xf32>
    %97 = math.tanh %96 : vector<8x128xf32>
    %cst_49 = arith.constant 1.000000e+00 : f32
    %98 = vector.broadcast %cst_49 : f32 to vector<8x128xf32>
    %99 = arith.addf %97, %98 : vector<8x128xf32>
    %cst_50 = arith.constant 5.000000e-01 : f32
    %100 = vector.broadcast %cst_50 : f32 to vector<8x128xf32>
    %101 = arith.mulf %100, %99 : vector<8x128xf32>
    %cst_51 = arith.constant 5.000000e-01 : f32
    %102 = vector.broadcast %cst_51 : f32 to vector<8x128xf32>
    %103 = arith.mulf %102, %94 : vector<8x128xf32>
    %104 = arith.select %15, %103, %94 : vector<8x128xi1>, vector<8x128xf32>
    %105 = math.tanh %104 : vector<8x128xf32>
    %cst_52 = arith.constant 1.000000e+00 : f32
    %106 = vector.broadcast %cst_52 : f32 to vector<8x128xf32>
    %107 = arith.addf %105, %106 : vector<8x128xf32>
    %cst_53 = arith.constant 5.000000e-01 : f32
    %108 = vector.broadcast %cst_53 : f32 to vector<8x128xf32>
    %109 = arith.mulf %108, %107 : vector<8x128xf32>
    %110 = arith.select %15, %109, %105 : vector<8x128xi1>, vector<8x128xf32>
    %111 = arith.mulf %101, %110 : vector<8x128xf32>
    %c64_i32_54 = arith.constant 64 : i32
    %112 = tpu.dynamic_rotate %80 by %c64_i32_54 dim 1 : vector<8x128xf32>, i32 -> vector<8x128xf32>
    %113 = arith.mulf %101, %112 : vector<8x128xf32>
    %c64_i32_55 = arith.constant 64 : i32
    %114 = tpu.dynamic_rotate %113 by %c64_i32_55 dim 1 : vector<8x128xf32>, i32 -> vector<8x128xf32>
    %115 = arith.addf %111, %114 : vector<8x128xf32>
    %c64_i32_56 = arith.constant 64 : i32
    %116 = tpu.dynamic_rotate %110 by %c64_i32_56 dim 1 : vector<8x128xf32>, i32 -> vector<8x128xf32>
    %117 = math.tanh %115 : vector<8x128xf32>
    %118 = arith.mulf %116, %117 : vector<8x128xf32>
    %119 = arith.index_cast %c2_i32 : i32 to index
    %c0_57 = arith.constant 0 : index
    %c0_58 = arith.constant 0 : index
    %120 = vector.load %arg5[%119, %c0_57, %c0_58] : memref<8x8x128xf32, #tpu.memory_space<vmem>>, vector<1x8x128xf32>
    %121 = vector.shape_cast %120 : vector<1x8x128xf32> to vector<8x128xf32>
    %122 = vector.shape_cast %118 : vector<8x128xf32> to vector<1x8x128xf32>
    tpu.vector_store %arg5[%119, %c0_57, %c0_58], %122 {strides = array<i32>} : memref<8x8x128xf32, #tpu.memory_space<vmem>>, vector<1x8x128xf32>,
    %c3_i32 = arith.constant 3 : i32
    %123 = arith.index_cast %c3_i32 : i32 to index
    %c0_59 = arith.constant 0 : index
    %c0_60 = arith.constant 0 : index
    %124 = vector.load %arg7[%123, %c0_59, %c0_60] : memref<8x8x256xf32, #tpu.memory_space<vmem>>, vector<1x8x256xf32>
    %125 = vector.shape_cast %124 : vector<1x8x256xf32> to vector<8x256xf32>
    %cst_61 = arith.constant dense<0.000000e+00> : vector<8x256xf32>
    %126 = tpu.matmul %118, %12, %cst_61 {dimension_numbers = #tpu.dot_dimension_numbers<[1], [0], [0], [1], [0, 0, 1, 1], [], []>} : vector<8x128xf32>, vector<128x256xf32>, vector<8x256xf32> -> vector<8x256xf32>
    %127 = arith.addf %125, %126 : vector<8x256xf32>
    %128 = vector.extract_strided_slice %127 {offsets = [0, 0], sizes = [8, 128], strides = [1, 1]} : vector<8x256xf32> to vector<8x128xf32>
    %129 = vector.extract_strided_slice %127 {offsets = [0, 128], sizes = [8, 128], strides = [1, 1]} : vector<8x256xf32> to vector<8x128xf32>
    %cst_62 = arith.constant 5.000000e-01 : f32
    %130 = vector.broadcast %cst_62 : f32 to vector<8x128xf32>
    %131 = arith.mulf %130, %128 : vector<8x128xf32>
    %132 = math.tanh %131 : vector<8x128xf32>
    %cst_63 = arith.constant 1.000000e+00 : f32
    %133 = vector.broadcast %cst_63 : f32 to vector<8x128xf32>
    %134 = arith.addf %132, %133 : vector<8x128xf32>
    %cst_64 = arith.constant 5.000000e-01 : f32
    %135 = vector.broadcast %cst_64 : f32 to vector<8x128xf32>
    %136 = arith.mulf %135, %134 : vector<8x128xf32>
    %cst_65 = arith.constant 5.000000e-01 : f32
    %137 = vector.broadcast %cst_65 : f32 to vector<8x128xf32>
    %138 = arith.mulf %137, %129 : vector<8x128xf32>
    %139 = arith.select %15, %138, %129 : vector<8x128xi1>, vector<8x128xf32>
    %140 = math.tanh %139 : vector<8x128xf32>
    %cst_66 = arith.constant 1.000000e+00 : f32
    %141 = vector.broadcast %cst_66 : f32 to vector<8x128xf32>
    %142 = arith.addf %140, %141 : vector<8x128xf32>
    %cst_67 = arith.constant 5.000000e-01 : f32
    %143 = vector.broadcast %cst_67 : f32 to vector<8x128xf32>
    %144 = arith.mulf %143, %142 : vector<8x128xf32>
    %145 = arith.select %15, %144, %140 : vector<8x128xi1>, vector<8x128xf32>
    %146 = arith.mulf %136, %145 : vector<8x128xf32>
    %c64_i32_68 = arith.constant 64 : i32
    %147 = tpu.dynamic_rotate %115 by %c64_i32_68 dim 1 : vector<8x128xf32>, i32 -> vector<8x128xf32>
    %148 = arith.mulf %136, %147 : vector<8x128xf32>
    %c64_i32_69 = arith.constant 64 : i32
    %149 = tpu.dynamic_rotate %148 by %c64_i32_69 dim 1 : vector<8x128xf32>, i32 -> vector<8x128xf32>
    %150 = arith.addf %146, %149 : vector<8x128xf32>
    %c64_i32_70 = arith.constant 64 : i32
    %151 = tpu.dynamic_rotate %145 by %c64_i32_70 dim 1 : vector<8x128xf32>, i32 -> vector<8x128xf32>
    %152 = math.tanh %150 : vector<8x128xf32>
    %153 = arith.mulf %151, %152 : vector<8x128xf32>
    %154 = arith.index_cast %c3_i32 : i32 to index
    %c0_71 = arith.constant 0 : index
    %c0_72 = arith.constant 0 : index
    %155 = vector.load %arg5[%154, %c0_71, %c0_72] : memref<8x8x128xf32, #tpu.memory_space<vmem>>, vector<1x8x128xf32>
    %156 = vector.shape_cast %155 : vector<1x8x128xf32> to vector<8x128xf32>
    %157 = vector.shape_cast %153 : vector<8x128xf32> to vector<1x8x128xf32>
    tpu.vector_store %arg5[%154, %c0_71, %c0_72], %157 {strides = array<i32>} : memref<8x8x128xf32, #tpu.memory_space<vmem>>, vector<1x8x128xf32>,
    %c4_i32 = arith.constant 4 : i32
    %158 = arith.index_cast %c4_i32 : i32 to index
    %c0_73 = arith.constant 0 : index
    %c0_74 = arith.constant 0 : index
    %159 = vector.load %arg7[%158, %c0_73, %c0_74] : memref<8x8x256xf32, #tpu.memory_space<vmem>>, vector<1x8x256xf32>
    %160 = vector.shape_cast %159 : vector<1x8x256xf32> to vector<8x256xf32>
    %cst_75 = arith.constant dense<0.000000e+00> : vector<8x256xf32>
    %161 = tpu.matmul %153, %12, %cst_75 {dimension_numbers = #tpu.dot_dimension_numbers<[1], [0], [0], [1], [0, 0, 1, 1], [], []>} : vector<8x128xf32>, vector<128x256xf32>, vector<8x256xf32> -> vector<8x256xf32>
    %162 = arith.addf %160, %161 : vector<8x256xf32>
    %163 = vector.extract_strided_slice %162 {offsets = [0, 0], sizes = [8, 128], strides = [1, 1]} : vector<8x256xf32> to vector<8x128xf32>
    %164 = vector.extract_strided_slice %162 {offsets = [0, 128], sizes = [8, 128], strides = [1, 1]} : vector<8x256xf32> to vector<8x128xf32>
    %cst_76 = arith.constant 5.000000e-01 : f32
    %165 = vector.broadcast %cst_76 : f32 to vector<8x128xf32>
    %166 = arith.mulf %165, %163 : vector<8x128xf32>
    %167 = math.tanh %166 : vector<8x128xf32>
    %cst_77 = arith.constant 1.000000e+00 : f32
    %168 = vector.broadcast %cst_77 : f32 to vector<8x128xf32>
    %169 = arith.addf %167, %168 : vector<8x128xf32>
    %cst_78 = arith.constant 5.000000e-01 : f32
    %170 = vector.broadcast %cst_78 : f32 to vector<8x128xf32>
    %171 = arith.mulf %170, %169 : vector<8x128xf32>
    %cst_79 = arith.constant 5.000000e-01 : f32
    %172 = vector.broadcast %cst_79 : f32 to vector<8x128xf32>
    %173 = arith.mulf %172, %164 : vector<8x128xf32>
    %174 = arith.select %15, %173, %164 : vector<8x128xi1>, vector<8x128xf32>
    %175 = math.tanh %174 : vector<8x128xf32>
    %cst_80 = arith.constant 1.000000e+00 : f32
    %176 = vector.broadcast %cst_80 : f32 to vector<8x128xf32>
    %177 = arith.addf %175, %176 : vector<8x128xf32>
    %cst_81 = arith.constant 5.000000e-01 : f32
    %178 = vector.broadcast %cst_81 : f32 to vector<8x128xf32>
    %179 = arith.mulf %178, %177 : vector<8x128xf32>
    %180 = arith.select %15, %179, %175 : vector<8x128xi1>, vector<8x128xf32>
    %181 = arith.mulf %171, %180 : vector<8x128xf32>
    %c64_i32_82 = arith.constant 64 : i32
    %182 = tpu.dynamic_rotate %150 by %c64_i32_82 dim 1 : vector<8x128xf32>, i32 -> vector<8x128xf32>
    %183 = arith.mulf %171, %182 : vector<8x128xf32>
    %c64_i32_83 = arith.constant 64 : i32
    %184 = tpu.dynamic_rotate %183 by %c64_i32_83 dim 1 : vector<8x128xf32>, i32 -> vector<8x128xf32>
    %185 = arith.addf %181, %184 : vector<8x128xf32>
    %c64_i32_84 = arith.constant 64 : i32
    %186 = tpu.dynamic_rotate %180 by %c64_i32_84 dim 1 : vector<8x128xf32>, i32 -> vector<8x128xf32>
    %187 = math.tanh %185 : vector<8x128xf32>
    %188 = arith.mulf %186, %187 : vector<8x128xf32>
    %189 = arith.index_cast %c4_i32 : i32 to index
    %c0_85 = arith.constant 0 : index
    %c0_86 = arith.constant 0 : index
    %190 = vector.load %arg5[%189, %c0_85, %c0_86] : memref<8x8x128xf32, #tpu.memory_space<vmem>>, vector<1x8x128xf32>
    %191 = vector.shape_cast %190 : vector<1x8x128xf32> to vector<8x128xf32>
    %192 = vector.shape_cast %188 : vector<8x128xf32> to vector<1x8x128xf32>
    tpu.vector_store %arg5[%189, %c0_85, %c0_86], %192 {strides = array<i32>} : memref<8x8x128xf32, #tpu.memory_space<vmem>>, vector<1x8x128xf32>,
    %c5_i32 = arith.constant 5 : i32
    %193 = arith.index_cast %c5_i32 : i32 to index
    %c0_87 = arith.constant 0 : index
    %c0_88 = arith.constant 0 : index
    %194 = vector.load %arg7[%193, %c0_87, %c0_88] : memref<8x8x256xf32, #tpu.memory_space<vmem>>, vector<1x8x256xf32>
    %195 = vector.shape_cast %194 : vector<1x8x256xf32> to vector<8x256xf32>
    %cst_89 = arith.constant dense<0.000000e+00> : vector<8x256xf32>
    %196 = tpu.matmul %188, %12, %cst_89 {dimension_numbers = #tpu.dot_dimension_numbers<[1], [0], [0], [1], [0, 0, 1, 1], [], []>} : vector<8x128xf32>, vector<128x256xf32>, vector<8x256xf32> -> vector<8x256xf32>
    %197 = arith.addf %195, %196 : vector<8x256xf32>
    %198 = vector.extract_strided_slice %197 {offsets = [0, 0], sizes = [8, 128], strides = [1, 1]} : vector<8x256xf32> to vector<8x128xf32>
    %199 = vector.extract_strided_slice %197 {offsets = [0, 128], sizes = [8, 128], strides = [1, 1]} : vector<8x256xf32> to vector<8x128xf32>
    %cst_90 = arith.constant 5.000000e-01 : f32
    %200 = vector.broadcast %cst_90 : f32 to vector<8x128xf32>
    %201 = arith.mulf %200, %198 : vector<8x128xf32>
    %202 = math.tanh %201 : vector<8x128xf32>
    %cst_91 = arith.constant 1.000000e+00 : f32
    %203 = vector.broadcast %cst_91 : f32 to vector<8x128xf32>
    %204 = arith.addf %202, %203 : vector<8x128xf32>
    %cst_92 = arith.constant 5.000000e-01 : f32
    %205 = vector.broadcast %cst_92 : f32 to vector<8x128xf32>
    %206 = arith.mulf %205, %204 : vector<8x128xf32>
    %cst_93 = arith.constant 5.000000e-01 : f32
    %207 = vector.broadcast %cst_93 : f32 to vector<8x128xf32>
    %208 = arith.mulf %207, %199 : vector<8x128xf32>
    %209 = arith.select %15, %208, %199 : vector<8x128xi1>, vector<8x128xf32>
    %210 = math.tanh %209 : vector<8x128xf32>
    %cst_94 = arith.constant 1.000000e+00 : f32
    %211 = vector.broadcast %cst_94 : f32 to vector<8x128xf32>
    %212 = arith.addf %210, %211 : vector<8x128xf32>
    %cst_95 = arith.constant 5.000000e-01 : f32
    %213 = vector.broadcast %cst_95 : f32 to vector<8x128xf32>
    %214 = arith.mulf %213, %212 : vector<8x128xf32>
    %215 = arith.select %15, %214, %210 : vector<8x128xi1>, vector<8x128xf32>
    %216 = arith.mulf %206, %215 : vector<8x128xf32>
    %c64_i32_96 = arith.constant 64 : i32
    %217 = tpu.dynamic_rotate %185 by %c64_i32_96 dim 1 : vector<8x128xf32>, i32 -> vector<8x128xf32>
    %218 = arith.mulf %206, %217 : vector<8x128xf32>
    %c64_i32_97 = arith.constant 64 : i32
    %219 = tpu.dynamic_rotate %218 by %c64_i32_97 dim 1 : vector<8x128xf32>, i32 -> vector<8x128xf32>
    %220 = arith.addf %216, %219 : vector<8x128xf32>
    %c64_i32_98 = arith.constant 64 : i32
    %221 = tpu.dynamic_rotate %215 by %c64_i32_98 dim 1 : vector<8x128xf32>, i32 -> vector<8x128xf32>
    %222 = math.tanh %220 : vector<8x128xf32>
    %223 = arith.mulf %221, %222 : vector<8x128xf32>
    %224 = arith.index_cast %c5_i32 : i32 to index
    %c0_99 = arith.constant 0 : index
    %c0_100 = arith.constant 0 : index
    %225 = vector.load %arg5[%224, %c0_99, %c0_100] : memref<8x8x128xf32, #tpu.memory_space<vmem>>, vector<1x8x128xf32>
    %226 = vector.shape_cast %225 : vector<1x8x128xf32> to vector<8x128xf32>
    %227 = vector.shape_cast %223 : vector<8x128xf32> to vector<1x8x128xf32>
    tpu.vector_store %arg5[%224, %c0_99, %c0_100], %227 {strides = array<i32>} : memref<8x8x128xf32, #tpu.memory_space<vmem>>, vector<1x8x128xf32>,
    %c6_i32 = arith.constant 6 : i32
    %228 = arith.index_cast %c6_i32 : i32 to index
    %c0_101 = arith.constant 0 : index
    %c0_102 = arith.constant 0 : index
    %229 = vector.load %arg7[%228, %c0_101, %c0_102] : memref<8x8x256xf32, #tpu.memory_space<vmem>>, vector<1x8x256xf32>
    %230 = vector.shape_cast %229 : vector<1x8x256xf32> to vector<8x256xf32>
    %cst_103 = arith.constant dense<0.000000e+00> : vector<8x256xf32>
    %231 = tpu.matmul %223, %12, %cst_103 {dimension_numbers = #tpu.dot_dimension_numbers<[1], [0], [0], [1], [0, 0, 1, 1], [], []>} : vector<8x128xf32>, vector<128x256xf32>, vector<8x256xf32> -> vector<8x256xf32>
    %232 = arith.addf %230, %231 : vector<8x256xf32>
    %233 = vector.extract_strided_slice %232 {offsets = [0, 0], sizes = [8, 128], strides = [1, 1]} : vector<8x256xf32> to vector<8x128xf32>
    %234 = vector.extract_strided_slice %232 {offsets = [0, 128], sizes = [8, 128], strides = [1, 1]} : vector<8x256xf32> to vector<8x128xf32>
    %cst_104 = arith.constant 5.000000e-01 : f32
    %235 = vector.broadcast %cst_104 : f32 to vector<8x128xf32>
    %236 = arith.mulf %235, %233 : vector<8x128xf32>
    %237 = math.tanh %236 : vector<8x128xf32>
    %cst_105 = arith.constant 1.000000e+00 : f32
    %238 = vector.broadcast %cst_105 : f32 to vector<8x128xf32>
    %239 = arith.addf %237, %238 : vector<8x128xf32>
    %cst_106 = arith.constant 5.000000e-01 : f32
    %240 = vector.broadcast %cst_106 : f32 to vector<8x128xf32>
    %241 = arith.mulf %240, %239 : vector<8x128xf32>
    %cst_107 = arith.constant 5.000000e-01 : f32
    %242 = vector.broadcast %cst_107 : f32 to vector<8x128xf32>
    %243 = arith.mulf %242, %234 : vector<8x128xf32>
    %244 = arith.select %15, %243, %234 : vector<8x128xi1>, vector<8x128xf32>
    %245 = math.tanh %244 : vector<8x128xf32>
    %cst_108 = arith.constant 1.000000e+00 : f32
    %246 = vector.broadcast %cst_108 : f32 to vector<8x128xf32>
    %247 = arith.addf %245, %246 : vector<8x128xf32>
    %cst_109 = arith.constant 5.000000e-01 : f32
    %248 = vector.broadcast %cst_109 : f32 to vector<8x128xf32>
    %249 = arith.mulf %248, %247 : vector<8x128xf32>
    %250 = arith.select %15, %249, %245 : vector<8x128xi1>, vector<8x128xf32>
    %251 = arith.mulf %241, %250 : vector<8x128xf32>
    %c64_i32_110 = arith.constant 64 : i32
    %252 = tpu.dynamic_rotate %220 by %c64_i32_110 dim 1 : vector<8x128xf32>, i32 -> vector<8x128xf32>
    %253 = arith.mulf %241, %252 : vector<8x128xf32>
    %c64_i32_111 = arith.constant 64 : i32
    %254 = tpu.dynamic_rotate %253 by %c64_i32_111 dim 1 : vector<8x128xf32>, i32 -> vector<8x128xf32>
    %255 = arith.addf %251, %254 : vector<8x128xf32>
    %c64_i32_112 = arith.constant 64 : i32
    %256 = tpu.dynamic_rotate %250 by %c64_i32_112 dim 1 : vector<8x128xf32>, i32 -> vector<8x128xf32>
    %257 = math.tanh %255 : vector<8x128xf32>
    %258 = arith.mulf %256, %257 : vector<8x128xf32>
    %259 = arith.index_cast %c6_i32 : i32 to index
    %c0_113 = arith.constant 0 : index
    %c0_114 = arith.constant 0 : index
    %260 = vector.load %arg5[%259, %c0_113, %c0_114] : memref<8x8x128xf32, #tpu.memory_space<vmem>>, vector<1x8x128xf32>
    %261 = vector.shape_cast %260 : vector<1x8x128xf32> to vector<8x128xf32>
    %262 = vector.shape_cast %258 : vector<8x128xf32> to vector<1x8x128xf32>
    tpu.vector_store %arg5[%259, %c0_113, %c0_114], %262 {strides = array<i32>} : memref<8x8x128xf32, #tpu.memory_space<vmem>>, vector<1x8x128xf32>,
    %c7_i32 = arith.constant 7 : i32
    %263 = arith.index_cast %c7_i32 : i32 to index
    %c0_115 = arith.constant 0 : index
    %c0_116 = arith.constant 0 : index
    %264 = vector.load %arg7[%263, %c0_115, %c0_116] : memref<8x8x256xf32, #tpu.memory_space<vmem>>, vector<1x8x256xf32>
    %265 = vector.shape_cast %264 : vector<1x8x256xf32> to vector<8x256xf32>
    %cst_117 = arith.constant dense<0.000000e+00> : vector<8x256xf32>
    %266 = tpu.matmul %258, %12, %cst_117 {dimension_numbers = #tpu.dot_dimension_numbers<[1], [0], [0], [1], [0, 0, 1, 1], [], []>} : vector<8x128xf32>, vector<128x256xf32>, vector<8x256xf32> -> vector<8x256xf32>
    %267 = arith.addf %265, %266 : vector<8x256xf32>
    %268 = vector.extract_strided_slice %267 {offsets = [0, 0], sizes = [8, 128], strides = [1, 1]} : vector<8x256xf32> to vector<8x128xf32>
    %269 = vector.extract_strided_slice %267 {offsets = [0, 128], sizes = [8, 128], strides = [1, 1]} : vector<8x256xf32> to vector<8x128xf32>
    %cst_118 = arith.constant 5.000000e-01 : f32
    %270 = vector.broadcast %cst_118 : f32 to vector<8x128xf32>
    %271 = arith.mulf %270, %268 : vector<8x128xf32>
    %272 = math.tanh %271 : vector<8x128xf32>
    %cst_119 = arith.constant 1.000000e+00 : f32
    %273 = vector.broadcast %cst_119 : f32 to vector<8x128xf32>
    %274 = arith.addf %272, %273 : vector<8x128xf32>
    %cst_120 = arith.constant 5.000000e-01 : f32
    %275 = vector.broadcast %cst_120 : f32 to vector<8x128xf32>
    %276 = arith.mulf %275, %274 : vector<8x128xf32>
    %cst_121 = arith.constant 5.000000e-01 : f32
    %277 = vector.broadcast %cst_121 : f32 to vector<8x128xf32>
    %278 = arith.mulf %277, %269 : vector<8x128xf32>
    %279 = arith.select %15, %278, %269 : vector<8x128xi1>, vector<8x128xf32>
    %280 = math.tanh %279 : vector<8x128xf32>
    %cst_122 = arith.constant 1.000000e+00 : f32
    %281 = vector.broadcast %cst_122 : f32 to vector<8x128xf32>
    %282 = arith.addf %280, %281 : vector<8x128xf32>
    %cst_123 = arith.constant 5.000000e-01 : f32
    %283 = vector.broadcast %cst_123 : f32 to vector<8x128xf32>
    %284 = arith.mulf %283, %282 : vector<8x128xf32>
    %285 = arith.select %15, %284, %280 : vector<8x128xi1>, vector<8x128xf32>
    %286 = arith.mulf %276, %285 : vector<8x128xf32>
    %c64_i32_124 = arith.constant 64 : i32
    %287 = tpu.dynamic_rotate %255 by %c64_i32_124 dim 1 : vector<8x128xf32>, i32 -> vector<8x128xf32>
    %288 = arith.mulf %276, %287 : vector<8x128xf32>
    %c64_i32_125 = arith.constant 64 : i32
    %289 = tpu.dynamic_rotate %288 by %c64_i32_125 dim 1 : vector<8x128xf32>, i32 -> vector<8x128xf32>
    %290 = arith.addf %286, %289 : vector<8x128xf32>
    %c64_i32_126 = arith.constant 64 : i32
    %291 = tpu.dynamic_rotate %285 by %c64_i32_126 dim 1 : vector<8x128xf32>, i32 -> vector<8x128xf32>
    %292 = math.tanh %290 : vector<8x128xf32>
    %293 = arith.mulf %291, %292 : vector<8x128xf32>
    %294 = arith.index_cast %c7_i32 : i32 to index
    %c0_127 = arith.constant 0 : index
    %c0_128 = arith.constant 0 : index
    %295 = vector.load %arg5[%294, %c0_127, %c0_128] : memref<8x8x128xf32, #tpu.memory_space<vmem>>, vector<1x8x128xf32>
    %296 = vector.shape_cast %295 : vector<1x8x128xf32> to vector<8x128xf32>
    %297 = vector.shape_cast %293 : vector<8x128xf32> to vector<1x8x128xf32>
    tpu.vector_store %arg5[%294, %c0_127, %c0_128], %297 {strides = array<i32>} : memref<8x8x128xf32, #tpu.memory_space<vmem>>, vector<1x8x128xf32>,
    %c8_i32 = arith.constant 8 : i32
    %c0_129 = arith.constant 0 : index
    %c0_130 = arith.constant 0 : index
    %298 = vector.load %arg8[%c0_129, %c0_130] : memref<8x128xf32, #tpu.memory_space<vmem>>, vector<8x128xf32>
    tpu.vector_store %arg8[%c0_129, %c0_130], %293 {strides = array<i32>} : memref<8x128xf32, #tpu.memory_space<vmem>>, vector<8x128xf32>,
    %c0_131 = arith.constant 0 : index
    %c0_132 = arith.constant 0 : index
    %299 = vector.load %arg9[%c0_131, %c0_132] : memref<8x128xf32, #tpu.memory_space<vmem>>, vector<8x128xf32>
    tpu.vector_store %arg9[%c0_131, %c0_132], %290 {strides = array<i32>} : memref<8x128xf32, #tpu.memory_space<vmem>>, vector<8x128xf32>,
    %c0_133 = arith.constant 0 : index
    %c0_134 = arith.constant 0 : index
    %c0_135 = arith.constant 0 : index
    %300 = vector.load %arg6[%c0_133, %c0_134, %c0_135] : memref<1x8x128xf32, #tpu.memory_space<vmem>>, vector<1x8x128xf32>
    %301 = vector.shape_cast %300 : vector<1x8x128xf32> to vector<8x128xf32>
    %302 = vector.shape_cast %290 : vector<8x128xf32> to vector<1x8x128xf32>
    tpu.vector_store %arg6[%c0_133, %c0_134, %c0_135], %302 {strides = array<i32>} : memref<1x8x128xf32, #tpu.memory_space<vmem>>, vector<1x8x128xf32>,
    return
  }
  func.func @transform_0(%arg0: i32) -> (i32, i32, i32) {
    %c0_i32 = arith.constant 0 : i32
    %c0_i32_0 = arith.constant 0 : i32
    %c0_i32_1 = arith.constant 0 : i32
    return %arg0, %c0_i32, %c0_i32_0 : i32, i32, i32
  }
  func.func @transform_1(%arg0: i32) -> (i32, i32) {
    %c0_i32 = arith.constant 0 : i32
    %c0_i32_0 = arith.constant 0 : i32
    %c0_i32_1 = arith.constant 0 : i32
    return %c0_i32, %c0_i32_0 : i32, i32
  }
  func.func @transform_2(%arg0: i32) -> (i32, i32) {
    %c0_i32 = arith.constant 0 : i32
    %c0_i32_0 = arith.constant 0 : i32
    %c0_i32_1 = arith.constant 0 : i32
    return %c0_i32, %c0_i32_0 : i32, i32
  }
  func.func @transform_3(%arg0: i32) -> (i32, i32) {
    %c0_i32 = arith.constant 0 : i32
    %c0_i32_0 = arith.constant 0 : i32
    %c0_i32_1 = arith.constant 0 : i32
    return %c0_i32, %c0_i32_0 : i32, i32
  }
  func.func @transform_4(%arg0: i32) -> (i32, i32, i32) {
    %c0_i32 = arith.constant 0 : i32
    %c0_i32_0 = arith.constant 0 : i32
    %c0_i32_1 = arith.constant 0 : i32
    return %arg0, %c0_i32, %c0_i32_0 : i32, i32, i32
  }
  func.func @transform_5(%arg0: i32) -> (i32, i32, i32) {
    %c0_i32 = arith.constant 0 : i32
    %c0_i32_0 = arith.constant 0 : i32
    %c0_i32_1 = arith.constant 0 : i32
    %c0_i32_2 = arith.constant 0 : i32
    return %c0_i32, %c0_i32_0, %c0_i32_1 : i32, i32, i32
  }
}

</mosaic_0001>

<bundles_post_ra>
// kernel: lstm_forward.1
= control target key start
LH: loop header
LB: loop body
LE: loop exit
PB: predicated region body
PF: predicated region fallthrough
CT: control target
= control target key end

     0   :  { %v1421_v3 = vmov 0.0   ;;  %s1422_s24 = smov 64   ;;  %s1986_s1 = inlined_call_operand.vmem [shape: f32[128,256], index: 1, kind: input, shape index: {}]   ;;  %s1987_s2 = inlined_call_operand.vmem [shape: f32[128,256], index: 2, kind: input, shape index: {}]   ;;  %s1988_s0 = inlined_call_operand.vmem [shape: f32[8,8,128], index: 0, kind: input, shape index: {}]   ;;  %s1989_s3 = inlined_call_operand.vmem [shape: f32[1,256], index: 3, kind: input, shape index: {}]   ;;  %s1990_s4 = inlined_call_operand.vmem [shape: f32[8,8,128], index: 4, kind: output, shape index: {0}]   ;;  %s1991_s5 = inlined_call_operand.vmem [shape: f32[1,8,128], index: 5, kind: output, shape index: {1}]  }
   0x1   :  { %v34_v0 = vld [vmem:[%s1986_s1 + $0x8] sm:$0xff]  ;;  %v36_v1 = vld [vmem:[%s1986_s1 + $0x18] sm:$0xff]  ;;  %v33_v2 = vld [vmem:[%s1986_s1] sm:$0xff]  ;;  %141 = vmatprep.mubr.f32.mxu1 %v1421_v3  ;;  %329 = vrot.lane.b32.xlu0 %v1421_v3, %s1422_s24 }
   0x2   :  { %v1051_v4 = vpack.c.bf16 %v36_v1, %v34_v0  ;;  %v35_v5 = vld [vmem:[%s1986_s1 + $0x10] sm:$0xff]  ;;  %v38_v6 = vld [vmem:[%s1986_s1 + $0x28] sm:$0xff]  ;;  %v40_v7 = vld [vmem:[%s1986_s1 + $0x38] sm:$0xff]  ;;  %605 = vmatprep.mubr.f32.mxu0 %v1421_v3 }
   0x3   :  { %v1053_v8 = vpack.c.bf16 %v35_v5, %v33_v2  ;;  %v1055_v9 = vpack.c.bf16 %v40_v7, %v38_v6  ;;  %v37_v10 = vld [vmem:[%s1986_s1 + $0x20] sm:$0xff]  ;;  %v39_v11 = vld [vmem:[%s1986_s1 + $0x30] sm:$0xff]  ;;  %v42_v12 = vld [vmem:[%s1986_s1 + $0x48] sm:$0xff] }
   0x4   :  { %1052 = vmatprep.subr.bf16.mxu1 %v1051_v4  ;;  %v44_v13 = vld [vmem:[%s1986_s1 + $0x58] sm:$0xff]  ;;  %v1057_v14 = vpack.c.bf16 %v39_v11, %v37_v10  ;;  %v41_v16 = vld [vmem:[%s1986_s1 + $0x40] sm:$0xff]  ;;  %v43_v17 = vld [vmem:[%s1986_s1 + $0x50] sm:$0xff] }
   0x5   :  { %1054 = vmatpush1.bf16.msra.mxu1 %v1053_v8  ;;  %v1059_v15 = vpack.c.bf16 %v44_v13, %v42_v12  ;;  %v46_v18 = vld [vmem:[%s1986_s1 + $0x68] sm:$0xff]  ;;  %v48_v19 = vld [vmem:[%s1986_s1 + $0x78] sm:$0xff]  ;;  %v1061_v20 = vpack.c.bf16 %v43_v17, %v41_v16  ;;  %v45_v22 = vld [vmem:[%s1986_s1 + $0x60] sm:$0xff] }
   0x6   :  { %1056 = vmatprep.subr.bf16.mxu1 %v1055_v9  ;;  %v1063_v21 = vpack.c.bf16 %v48_v19, %v46_v18  ;;  %v47_v23 = vld [vmem:[%s1986_s1 + $0x70] sm:$0xff]  ;;  %v50_v24 = vld [vmem:[%s1986_s1 + $0x88] sm:$0xff]  ;;  %v52_v25 = vld [vmem:[%s1986_s1 + $0x98] sm:$0xff] }
   0x7   :  { %v207_v26 = vld [vmem:[%s1987_s2 + $0x8] sm:$0xff]  ;;  %v209_v27 = vld [vmem:[%s1987_s2 + $0x18] sm:$0xff]  ;;  %v206_v28 = vld [vmem:[%s1987_s2] sm:$0xff]  ;;  %v1065_v29 = vpack.c.bf16 %v47_v23, %v45_v22  ;;  %v1067_v34 = vpack.c.bf16 %v52_v25, %v50_v24 }
   0x8   :  { %v49_v30 = vld [vmem:[%s1986_s1 + $0x80] sm:$0xff]  ;;  %v1523_v31 = vpack.c.bf16 %v209_v27, %v207_v26  ;;  %v208_v32 = vld [vmem:[%s1987_s2 + $0x10] sm:$0xff]  ;;  %v211_v33 = vld [vmem:[%s1987_s2 + $0x28] sm:$0xff] }
   0x9   :  { %1058 = vmatpush1.bf16.msra.mxu1 %v1057_v14  ;;  %v51_v35 = vld [vmem:[%s1986_s1 + $0x90] sm:$0xff]  ;;  %v54_v36 = vld [vmem:[%s1986_s1 + $0xa8] sm:$0xff]  ;;  %v1537_v37 = vpack.c.bf16 %v208_v32, %v206_v28  ;;  %v213_v38 = vld [vmem:[%s1987_s2 + $0x38] sm:$0xff] }
   0xa   :  { %1060 = vmatprep.subr.bf16.mxu1 %v1059_v15  ;;  %v56_v39 = vld [vmem:[%s1986_s1 + $0xb8] sm:$0xff]  ;;  %v1545_v40 = vpack.c.bf16 %v213_v38, %v211_v33  ;;  %v210_v41 = vld [vmem:[%s1987_s2 + $0x20] sm:$0xff]  ;;  %v212_v42 = vld [vmem:[%s1987_s2 + $0x30] sm:$0xff]  ;;  %1180 = vmatprep.subr.bf16.mxu0 %v1523_v31  ;;  %v1069_v45 = vpack.c.bf16 %v51_v35, %v49_v30 }
   0xb   :  { %v215_v43 = vld [vmem:[%s1987_s2 + $0x48] sm:$0xff]  ;;  %v217_v44 = vld [vmem:[%s1987_s2 + $0x58] sm:$0xff]  ;;  %1182 = vmatpush1.bf16.msra.mxu0 %v1537_v37  ;;  %v1071_v46 = vpack.c.bf16 %v56_v39, %v54_v36  ;;  %v53_v47 = vld [vmem:[%s1986_s1 + $0xa0] sm:$0xff]  ;;  %v1571_v50 = vpack.c.bf16 %v212_v42, %v210_v41 }
   0xc   :  { %1184 = vmatprep.subr.bf16.mxu0 %v1545_v40  ;;  %v55_v48 = vld [vmem:[%s1986_s1 + $0xb0] sm:$0xff]  ;;  %v58_v49 = vld [vmem:[%s1986_s1 + $0xc8] sm:$0xff]  ;;  %v60_v51 = vld [vmem:[%s1986_s1 + $0xd8] sm:$0xff]  ;;  %v1576_v52 = vpack.c.bf16 %v217_v44, %v215_v43 }
   0xd   :  { %1062 = vmatpush1.bf16.msra.mxu1 %v1061_v20  ;;  %v214_v53 = vld [vmem:[%s1987_s2 + $0x40] sm:$0xff]  ;;  %v216_v54 = vld [vmem:[%s1987_s2 + $0x50] sm:$0xff]  ;;  %v219_v55 = vld [vmem:[%s1987_s2 + $0x68] sm:$0xff]  ;;  %v1073_v57 = vpack.c.bf16 %v55_v48, %v53_v47  ;;  %v1075_v58 = vpack.c.bf16 %v60_v51, %v58_v49  ;;  %v67_v49 = vlaneseq }
   0xe   :  { %1064 = vmatprep.subr.bf16.mxu1 %v1063_v21  ;;  %v221_v56 = vld [vmem:[%s1987_s2 + $0x78] sm:$0xff]  ;;  %v57_v59 = vld [vmem:[%s1986_s1 + $0xc0] sm:$0xff]  ;;  %v59_v60 = vld [vmem:[%s1986_s1 + $0xd0] sm:$0xff]  ;;  %v1601_v62 = vpack.c.bf16 %v216_v54, %v214_v53 }
   0xf   :  { %1186 = vmatpush1.bf16.msra.mxu0 %v1571_v50  ;;  %v62_v61 = vld [vmem:[%s1986_s1 + $0xe8] sm:$0xff]  ;;  %v64_v63 = vld [vmem:[%s1986_s1 + $0xf8] sm:$0xff]  ;;  %v1606_v0 = vpack.c.bf16 %v221_v56, %v219_v55  ;;  %v218_v1 = vld [vmem:[%s1987_s2 + $0x60] sm:$0xff]  ;;  %v1077_v6 = vpack.c.bf16 %v59_v60, %v57_v59  ;;  %v68_v54 = vshrl.u32 %v67_v49, 7 }
  0x10   :  { %1188 = vmatprep.subr.bf16.mxu0 %v1576_v52  ;;  %v220_v2 = vld [vmem:[%s1987_s2 + $0x70] sm:$0xff]  ;;  %v223_v4 = vld [vmem:[%s1987_s2 + $0x88] sm:$0xff]  ;;  %v225_v5 = vld [vmem:[%s1987_s2 + $0x98] sm:$0xff]  ;;  %v1079_v7 = vpack.c.bf16 %v64_v63, %v62_v61 }
  0x11   :  { %1066 = vmatpush1.bf16.msra.mxu1 %v1065_v29  ;;  %v61_v8 = vld [vmem:[%s1986_s1 + $0xe0] sm:$0xff]  ;;  %v63_v9 = vld [vmem:[%s1986_s1 + $0xf0] sm:$0xff]  ;;  %v1628_v10 = vpack.c.bf16 %v220_v2, %v218_v1  ;;  %v1630_v11 = vpack.c.bf16 %v225_v5, %v223_v4  ;;  %v227_v14 = vld [vmem:[%s1987_s2 + $0xa8] sm:$0xff]  ;;  %v73_v59 = vsub.s32 1, %v68_v54  ;;  %v1790_v1 = vand.u32 127, %v67_v49 }
  0x12   :  { %1068 = vmatprep.subr.bf16.mxu1 %v1067_v34  ;;  %v222_v12 = vld [vmem:[%s1987_s2 + $0x80] sm:$0xff]  ;;  %v224_v13 = vld [vmem:[%s1987_s2 + $0x90] sm:$0xff]  ;;  %v229_v15 = vld [vmem:[%s1987_s2 + $0xb8] sm:$0xff]  ;;  %v1081_v16 = vpack.c.bf16 %v63_v9, %v61_v8 }
  0x13   :  { %1190 = vmatpush1.bf16.msra.mxu0 %v1601_v62  ;;  %v1646_v17 = vpack.c.bf16 %v224_v13, %v222_v12  ;;  %v1648_v18 = vpack.c.bf16 %v229_v15, %v227_v14  ;;  %v226_v19 = vld [vmem:[%s1987_s2 + $0xa0] sm:$0xff]  ;;  %v228_v20 = vld [vmem:[%s1987_s2 + $0xb0] sm:$0xff]  ;;  %v231_v22 = vld [vmem:[%s1987_s2 + $0xc8] sm:$0xff]  ;;  %vm240_vm0 = vcmp.ge.s32.totalorder %v1790_v1, 64 }
  0x14   :  { %1192 = vmatprep.subr.bf16.mxu0 %v1606_v0  ;;  %v25_v21 = vld [vmem:[%s1988_s0] sm:$0xff]  ;;  %v233_v23 = vld [vmem:[%s1987_s2 + $0xd8] sm:$0xff]  ;;  %v1668_v24 = vpack.c.bf16 %v228_v20, %v226_v19  ;;  %v232_v26 = vld [vmem:[%s1987_s2 + $0xd0] sm:$0xff] }
  0x15   :  { %1070 = vmatpush1.bf16.msra.mxu1 %v1069_v45  ;;  %v230_v25 = vld [vmem:[%s1987_s2 + $0xc0] sm:$0xff]  ;;  %v1676_v27 = vpack.c.bf16 %v233_v23, %v231_v22  ;;  %v26_v28 = vld [vmem:[%s1988_s0 + $0x8] sm:$0xff]  ;;  %v237_v30 = vld [vmem:[%s1987_s2 + $0xf8] sm:$0xff] }
  0x16   :  { %1072 = vmatprep.subr.bf16.mxu1 %v1071_v46  ;;  %v235_v29 = vld [vmem:[%s1987_s2 + $0xe8] sm:$0xff]  ;;  %v1691_v32 = vpack.c.bf16 %v232_v26, %v230_v25  ;;  %v234_v33 = vld [vmem:[%s1987_s2 + $0xe0] sm:$0xff]  ;;  %v236_v34 = vld [vmem:[%s1987_s2 + $0xf0] sm:$0xff] }
  0x17   :  { %1194 = vmatpush1.bf16.msra.mxu0 %v1628_v10  ;;  %v1700_v35 = vpack.c.bf16 %v237_v30, %v235_v29  ;;  %v27_v36 = vld [vmem:[%s1988_s0 + $0x10] sm:$0xff]  ;;  %v1709_v38 = vpack.c.bf16 %v236_v34, %v234_v33  ;;  %v28_v39 = vld [vmem:[%s1988_s0 + $0x18] sm:$0xff]  ;;  %v29_v41 = vld [vmem:[%s1988_s0 + $0x20] sm:$0xff] }
  0x18   :  { %1196 = vmatprep.subr.bf16.mxu0 %v1630_v11  ;;  %v30_v42 = vld [vmem:[%s1988_s0 + $0x28] sm:$0xff]  ;;  %v31_v43 = vld [vmem:[%s1988_s0 + $0x30] sm:$0xff]  ;;  %v32_v44 = vld [vmem:[%s1988_s0 + $0x38] sm:$0xff] }
  0x19   :  { %1074 = vmatpush1.bf16.msra.mxu1 %v1073_v57  ;;  %v69_v57 = vsub.s32 0, %v68_v54 }
  0x1a   :  { %1076 = vmatprep.subr.bf16.mxu1 %v1075_v58  ;;  %v65_v58 = vld [vmem:[%s1989_s3] sm:$0x3] }
  0x1b   :  { %1198 = vmatpush1.bf16.msra.mxu0 %v1646_v17  ;;  %v1788_v63 = vrot.slane %v65_v58, %v69_v57  ;;  %v1792_v2 = vrot.slane %v65_v58, %v73_v59 }
  0x1c   :  { %1200 = vmatprep.subr.bf16.mxu0 %v1648_v18 }
  0x1d   :  { %1078 = vmatpush1.bf16.msra.mxu1 %v1077_v6 }
  0x1e   :  { %1080 = vmatprep.subr.bf16.mxu1 %v1079_v7 }
  0x1f   :  { %1202 = vmatpush1.bf16.msra.mxu0 %v1668_v24 }
  0x20   :  { %1204 = vmatprep.subr.bf16.mxu0 %v1676_v27 }
  0x21   :  { %1082 = vmatpush1.bf16.msra.mxu1 %v1081_v16 }
  0x22   :  { %1084 = vmatprep.subr.bf16.mxu1 %v1523_v31 }
  0x23   :  { %1206 = vmatpush1.bf16.msra.mxu0 %v1691_v32 }
  0x24   :  { %142 = vmatmul.mubr.f32.vlgmr.msra.gmra.mrb[0].mxu1 %v25_v21  ;;  %1208 = vmatprep.subr.bf16.mxu0 %v1700_v35 }
  0x25   :  { %1086 = vmatpush1.bf16.msra.mxu1 %v1537_v37  ;;  %147 = vmatprep.mubr.f32.mxu1 %v1421_v3 }
  0x26   :  { %1088 = vmatprep.subr.bf16.mxu1 %v1545_v40 }
  0x27   :  { %1210 = vmatpush1.bf16.msra.mxu0 %v1709_v38 }
  0x28   :  { %148 = vmatmul.mubr.f32.gmra.mrb[2].mxu1 %v26_v28  ;;  %1212 = vmatprep.subr.bf16.mxu0 %v1523_v31 }
  0x29   :  { %1090 = vmatpush1.bf16.msra.mxu1 %v1571_v50  ;;  %153 = vmatprep.mubr.f32.mxu1 %v1421_v3 }
  0x2a   :  { %1092 = vmatprep.subr.bf16.mxu1 %v1576_v52 }
  0x2c   :  { %154 = vmatmul.mubr.f32.gmra.mrb[4].mxu1 %v27_v36 }
  0x2d   :  { %1094 = vmatpush1.bf16.msra.mxu1 %v1601_v62  ;;  %159 = vmatprep.mubr.f32.mxu1 %v1421_v3 }
  0x2e   :  { %1096 = vmatprep.subr.bf16.mxu1 %v1606_v0 }
  0x30   :  { %160 = vmatmul.mubr.f32.gmra.mrb[6].mxu1 %v28_v39 }
  0x31   :  { %1098 = vmatpush1.bf16.msra.mxu1 %v1628_v10  ;;  %165 = vmatprep.mubr.f32.mxu1 %v1421_v3 }
  0x32   :  { %1100 = vmatprep.subr.bf16.mxu1 %v1630_v11 }
  0x34   :  { %166 = vmatmul.mubr.f32.gmra.mrb[8].mxu1 %v29_v41 }
  0x35   :  { %1102 = vmatpush1.bf16.msra.mxu1 %v1646_v17  ;;  %171 = vmatprep.mubr.f32.mxu1 %v1421_v3 }
  0x36   :  { %1104 = vmatprep.subr.bf16.mxu1 %v1648_v18 }
  0x38   :  { %172 = vmatmul.mubr.f32.gmra.mrb[10].mxu1 %v30_v42 }
  0x39   :  { %1106 = vmatpush1.bf16.msra.mxu1 %v1668_v24  ;;  %177 = vmatprep.mubr.f32.mxu1 %v1421_v3 }
  0x3a   :  { %1108 = vmatprep.subr.bf16.mxu1 %v1676_v27 }
  0x3c   :  { %178 = vmatmul.mubr.f32.gmra.mrb[12].mxu1 %v31_v43 }
  0x3d   :  { %1110 = vmatpush1.bf16.msra.mxu1 %v1691_v32  ;;  %183 = vmatprep.mubr.f32.mxu1 %v1421_v3 }
  0x3e   :  { %1112 = vmatprep.subr.bf16.mxu1 %v1700_v35 }
  0x40   :  { %184 = vmatmul.mubr.f32.gmra.mrb[14].mxu1 %v32_v44 }
  0x41   :  { %1114 = vmatpush1.bf16.msra.mxu1 %v1709_v38  ;;  %309 = vmatprep.mubr.f32.mxu1 %v1421_v3 }
  0x42   :  { %1116 = vmatprep.subr.bf16.mxu1 %v1523_v31 }
  0x44   :  { %310 = vmatmul.mubr.f32.vlgmr.msra.gmra.mrb[0].mxu1 %v1421_v3 }
  0x45   :  { %1118 = vmatpush1.bf16.msra.mxu1 %v1537_v37  ;;  %407 = vmatprep.mubr.f32.mxu1 %v1421_v3 }
  0x46   :  { %1120 = vmatprep.subr.bf16.mxu1 %v1545_v40 }
  0x49   :  { %1122 = vmatpush1.bf16.msra.mxu1 %v1571_v50 }
  0x4a   :  { %1124 = vmatprep.subr.bf16.mxu1 %v1576_v52 }
  0x4d   :  { %1126 = vmatpush1.bf16.msra.mxu1 %v1601_v62 }
  0x4e   :  { %1128 = vmatprep.subr.bf16.mxu1 %v1606_v0 }
  0x51   :  { %1130 = vmatpush1.bf16.msra.mxu1 %v1628_v10 }
  0x52   :  { %1132 = vmatprep.subr.bf16.mxu1 %v1630_v11 }
  0x55   :  { %1134 = vmatpush1.bf16.msra.mxu1 %v1646_v17 }
  0x56   :  { %1136 = vmatprep.subr.bf16.mxu1 %v1648_v18 }
  0x59   :  { %1138 = vmatpush1.bf16.msra.mxu1 %v1668_v24 }
  0x5a   :  { %1140 = vmatprep.subr.bf16.mxu1 %v1676_v27 }
  0x5d   :  { %1142 = vmatpush1.bf16.msra.mxu1 %v1691_v32 }
  0x5e   :  { %1144 = vmatprep.subr.bf16.mxu1 %v1700_v35 }
  0x61   :  { %1146 = vmatpush1.bf16.msra.mxu1 %v1709_v38 }
  0x62   :  { %1148 = vmatprep.subr.bf16.mxu1 %v1523_v31 }
  0x73   :  { %v330_v16 = vpop.permute.xlu0 %329 }
 0x103   :  { %v1765_v45 = vpop.f32.mrb[6].mxu1 }
 0x104   :  { %v1767_v46 = vpop.f32.mrb[7].mxu1 }
 0x107   :  { %v1769_v47 = vpop.f32.mrb[8].mxu1 }
 0x108   :  { %v1771_v48 = vpop.f32.mrb[9].mxu1 }
 0x10b   :  { %v1773_v51 = vpop.f32.mrb[10].mxu1 }
 0x10c   :  { %v1775_v53 = vpop.f32.mrb[11].mxu1 }
 0x10f   :  { %v1777_v55 = vpop.f32.mrb[12].mxu1 }
 0x110   :  { %v1779_v56 = vpop.f32.mrb[13].mxu1 }
 0x113   :  { %v1784_v60 = vpop.f32.mrb[14].mxu1 }
 0x114   :  { %v1786_v61 = vpop.f32.mrb[15].mxu1 }
 0x117   :  { %v311_v4 = vpop.f32.mrb[0].mxu1 }
 0x118   :  { %v1339_v5 = vadd.f32 %v311_v4, %v1788_v63  ;;  %v313_v6 = vpop.f32.mrb[1].mxu1 }
 0x119   :  { %v1340_v7 = vadd.f32 %v313_v6, %v1792_v2 }
 0x11a   :  { %v318_v8 = vmul.f32 0.5, %v1339_v5 }
 0x11b   :  { %v322_v9 = vmul.f32 0.5, %v1340_v7 }
 0x11c   :  { %1373 = vtanh.f32 %v318_v8 }
 0x11d   :  { %v323_v12 = vsel %vm240_vm0, %v322_v9, %v1340_v7 }
 0x11e   :  { %1375 = vtanh.f32 %v323_v12 }
 0x126   :  { %v1374_v13 = vpop.eup %1373 }
 0x127   :  { %v320_v14 = vadd.f32 1.0, %v1374_v13 }
 0x128   :  { %v1376_v15 = vpop.eup %1375 }
 0x129   :  { %v321_v19 = vmul.f32 0.5, %v320_v14  ;;  %v325_v20 = vadd.f32 1.0, %v1376_v15 }
 0x12b   :  { %v331_v21 = vmul.f32 %v330_v16, %v321_v19  ;;  %v326_v22 = vmul.f32 0.5, %v325_v20 }
 0x12d   :  { %332 = vrot.lane.b32.xlu0 %v331_v21, %s1422_s24  ;;  %v327_v23 = vsel %vm240_vm0, %v326_v22, %v1376_v15 }
 0x12e   :  { %335 = vrot.lane.b32.xlu1 %v327_v23, %s1422_s24  ;;  %v328_v25 = vmul.f32 %v327_v23, %v321_v19 }
 0x19f   :  { %v333_v26 = vpop.permute.xlu0 %332 }
 0x1a0   :  { %v334_v28 = vadd.f32 %v333_v26, %v328_v25  ;;  %v336_v30 = vpop.permute.xlu1 %335 }
 0x1a2   :  { %1377 = vtanh.f32 %v334_v28  ;;  %427 = vrot.lane.b32.xlu1 %v334_v28, %s1422_s24 }
 0x1ac   :  { %v1378_v29 = vpop.eup %1377 }
 0x1ad   :  { %v338_v33 = vmul.f32 %v1378_v29, %v336_v30 }
 0x1af   :  { %339 = vst [vmem:[%s1990_s4] sm:$0xff] %v338_v33  ;;  %408 = vmatmul.mubr.f32.vlgmr.msra.gmra.mrb[2].mxu1 %v338_v33 }
 0x1b0   :  { %1150 = vmatpush1.bf16.msra.mxu1 %v1537_v37  ;;  %506 = vmatprep.mubr.f32.mxu1 %v1421_v3 }
 0x1b1   :  { %1152 = vmatprep.subr.bf16.mxu1 %v1545_v40 }
 0x1b4   :  { %1154 = vmatpush1.bf16.msra.mxu1 %v1571_v50 }
 0x1b5   :  { %1156 = vmatprep.subr.bf16.mxu1 %v1576_v52 }
 0x1b8   :  { %1158 = vmatpush1.bf16.msra.mxu1 %v1601_v62 }
 0x1b9   :  { %1160 = vmatprep.subr.bf16.mxu1 %v1606_v0 }
 0x1bc   :  { %1162 = vmatpush1.bf16.msra.mxu1 %v1628_v10 }
 0x1bd   :  { %1164 = vmatprep.subr.bf16.mxu1 %v1630_v11 }
 0x1c0   :  { %1166 = vmatpush1.bf16.msra.mxu1 %v1646_v17 }
 0x1c1   :  { %1168 = vmatprep.subr.bf16.mxu1 %v1648_v18 }
 0x1c4   :  { %1170 = vmatpush1.bf16.msra.mxu1 %v1668_v24 }
 0x1c5   :  { %1172 = vmatprep.subr.bf16.mxu1 %v1676_v27 }
 0x1c8   :  { %1174 = vmatpush1.bf16.msra.mxu1 %v1691_v32 }
 0x1c9   :  { %1176 = vmatprep.subr.bf16.mxu1 %v1700_v35 }
 0x1cc   :  { %1178 = vmatpush1.bf16.msra.mxu1 %v1709_v38 }
 0x214   :  { %v428_v4 = vpop.permute.xlu1 %427 }
 0x282   :  { %v409_v34 = vpop.f32.mrb[2].mxu1 }
 0x283   :  { %v1341_v36 = vadd.f32 %v409_v34, %v1788_v63  ;;  %v411_v39 = vpop.f32.mrb[3].mxu1 }
 0x284   :  { %v1342_v41 = vadd.f32 %v411_v39, %v1792_v2 }
 0x285   :  { %v416_v42 = vmul.f32 0.5, %v1341_v36 }
 0x286   :  { %v420_v43 = vmul.f32 0.5, %v1342_v41 }
 0x287   :  { %1379 = vtanh.f32 %v416_v42 }
 0x288   :  { %v421_v44 = vsel %vm240_vm0, %v420_v43, %v1342_v41 }
 0x289   :  { %1381 = vtanh.f32 %v421_v44 }
 0x291   :  { %v1380_v49 = vpop.eup %1379 }
 0x292   :  { %v418_v54 = vadd.f32 1.0, %v1380_v49 }
 0x293   :  { %v1382_v57 = vpop.eup %1381 }
 0x294   :  { %v419_v58 = vmul.f32 0.5, %v418_v54  ;;  %v423_v59 = vadd.f32 1.0, %v1382_v57 }
 0x296   :  { %v429_v5 = vmul.f32 %v428_v4, %v419_v58  ;;  %v424_v6 = vmul.f32 0.5, %v423_v59  ;;  %v164_v59 = vadd.f32 %v1767_v46, %v1792_v2 }
 0x298   :  { %430 = vrot.lane.b32.xlu0 %v429_v5, %s1422_s24  ;;  %v425_v7 = vsel %vm240_vm0, %v424_v6, %v1382_v57 }
 0x299   :  { %433 = vrot.lane.b32.xlu1 %v425_v7, %s1422_s24  ;;  %v426_v8 = vmul.f32 %v425_v7, %v419_v58  ;;  %v162_v58 = vadd.f32 %v1765_v45, %v1788_v63 }
 0x30a   :  { %v431_v9 = vpop.permute.xlu0 %430 }
 0x30b   :  { %v432_v12 = vadd.f32 %v431_v9, %v426_v8  ;;  %v434_v14 = vpop.permute.xlu1 %433 }
 0x30d   :  { %1383 = vtanh.f32 %v432_v12  ;;  %526 = vrot.lane.b32.xlu0 %v432_v12, %s1422_s24 }
 0x317   :  { %v1384_v13 = vpop.eup %1383 }
 0x318   :  { %v436_v15 = vmul.f32 %v1384_v13, %v434_v14 }
 0x31a   :  { %1044 = vst [vmem:[%s1990_s4 + $0x8] sm:$0xff] %v436_v15  ;;  %507 = vmatmul.mubr.f32.vlgmr.msra.gmra.mrb[4].mxu1 %v436_v15 }
 0x37f   :  { %v527_v34 = vpop.permute.xlu0 %526 }
 0x3ed   :  { %v508_v16 = vpop.f32.mrb[4].mxu1 }
 0x3ee   :  { %v1343_v19 = vadd.f32 %v508_v16, %v1788_v63  ;;  %v510_v20 = vpop.f32.mrb[5].mxu1 }
 0x3ef   :  { %v1344_v21 = vadd.f32 %v510_v20, %v1792_v2 }
 0x3f0   :  { %v515_v22 = vmul.f32 0.5, %v1343_v19 }
 0x3f1   :  { %v519_v23 = vmul.f32 0.5, %v1344_v21 }
 0x3f2   :  { %1385 = vtanh.f32 %v515_v22 }
 0x3f3   :  { %v520_v25 = vsel %vm240_vm0, %v519_v23, %v1344_v21 }
 0x3f4   :  { %1387 = vtanh.f32 %v520_v25 }
 0x3fc   :  { %v1386_v26 = vpop.eup %1385 }
 0x3fd   :  { %v517_v28 = vadd.f32 1.0, %v1386_v26 }
 0x3fe   :  { %v1388_v29 = vpop.eup %1387 }
 0x3ff   :  { %v518_v30 = vmul.f32 0.5, %v517_v28  ;;  %v522_v33 = vadd.f32 1.0, %v1388_v29 }
 0x401   :  { %v528_v36 = vmul.f32 %v527_v34, %v518_v30  ;;  %v523_v39 = vmul.f32 0.5, %v522_v33  ;;  %v170_v33 = vadd.f32 %v1771_v48, %v1792_v2 }
 0x403   :  { %529 = vrot.lane.b32.xlu1 %v528_v36, %s1422_s24  ;;  %v524_v41 = vsel %vm240_vm0, %v523_v39, %v1388_v29 }
 0x404   :  { %532 = vrot.lane.b32.xlu0 %v524_v41, %s1422_s24  ;;  %v525_v42 = vmul.f32 %v524_v41, %v518_v30  ;;  %v168_v30 = vadd.f32 %v1769_v47, %v1788_v63 }
 0x475   :  { %v530_v43 = vpop.permute.xlu1 %529 }
 0x476   :  { %v531_v44 = vadd.f32 %v530_v43, %v525_v42  ;;  %v533_v54 = vpop.permute.xlu0 %532 }
 0x478   :  { %1389 = vtanh.f32 %v531_v44  ;;  %625 = vrot.lane.b32.xlu1 %v531_v44, %s1422_s24 }
 0x482   :  { %v1390_v49 = vpop.eup %1389 }
 0x483   :  { %v535_v57 = vmul.f32 %v1390_v49, %v533_v54 }
 0x485   :  { %1045 = vst [vmem:[%s1990_s4 + $0x10] sm:$0xff] %v535_v57  ;;  %606 = vmatmul.mubr.f32.vlgmr.msra.gmra.mrb[0].mxu0 %v535_v57 }
 0x486   :  { %1214 = vmatpush1.bf16.msra.mxu0 %v1537_v37  ;;  %704 = vmatprep.mubr.f32.mxu0 %v1421_v3 }
 0x487   :  { %1216 = vmatprep.subr.bf16.mxu0 %v1545_v40 }
 0x48a   :  { %1218 = vmatpush1.bf16.msra.mxu0 %v1571_v50 }
 0x48b   :  { %1220 = vmatprep.subr.bf16.mxu0 %v1576_v52 }
 0x48e   :  { %1222 = vmatpush1.bf16.msra.mxu0 %v1601_v62 }
 0x48f   :  { %1224 = vmatprep.subr.bf16.mxu0 %v1606_v0 }
 0x492   :  { %1226 = vmatpush1.bf16.msra.mxu0 %v1628_v10 }
 0x493   :  { %1228 = vmatprep.subr.bf16.mxu0 %v1630_v11 }
 0x496   :  { %1230 = vmatpush1.bf16.msra.mxu0 %v1646_v17 }
 0x497   :  { %1232 = vmatprep.subr.bf16.mxu0 %v1648_v18 }
 0x49a   :  { %1234 = vmatpush1.bf16.msra.mxu0 %v1668_v24 }
 0x49b   :  { %1236 = vmatprep.subr.bf16.mxu0 %v1676_v27 }
 0x49e   :  { %1238 = vmatpush1.bf16.msra.mxu0 %v1691_v32 }
 0x49f   :  { %1240 = vmatprep.subr.bf16.mxu0 %v1700_v35 }
 0x4a2   :  { %1242 = vmatpush1.bf16.msra.mxu0 %v1709_v38 }
 0x4a3   :  { %1244 = vmatprep.subr.bf16.mxu0 %v1523_v31 }
 0x4ea   :  { %v626_v45 = vpop.permute.xlu1 %625 }
 0x558   :  { %v607_v4 = vpop.f32.mrb[0].mxu0 }
 0x559   :  { %v612_v5 = vadd.f32 %v607_v4, %v162_v58  ;;  %v609_v6 = vpop.f32.mrb[1].mxu0 }
 0x55a   :  { %v613_v7 = vadd.f32 %v609_v6, %v164_v59 }
 0x55b   :  { %v614_v8 = vmul.f32 0.5, %v612_v5 }
 0x55c   :  { %v618_v9 = vmul.f32 0.5, %v613_v7 }
 0x55d   :  { %1391 = vtanh.f32 %v614_v8 }
 0x55e   :  { %v619_v12 = vsel %vm240_vm0, %v618_v9, %v613_v7 }
 0x55f   :  { %1393 = vtanh.f32 %v619_v12 }
 0x567   :  { %v1392_v13 = vpop.eup %1391 }
 0x568   :  { %v616_v14 = vadd.f32 1.0, %v1392_v13 }
 0x569   :  { %v1394_v15 = vpop.eup %1393 }
 0x56a   :  { %v617_v16 = vmul.f32 0.5, %v616_v14  ;;  %v621_v19 = vadd.f32 1.0, %v1394_v15  ;;  %v174_v14 = vadd.f32 %v1773_v51, %v1788_v63 }
 0x56c   :  { %v627_v20 = vmul.f32 %v626_v45, %v617_v16  ;;  %v622_v21 = vmul.f32 0.5, %v621_v19 }
 0x56e   :  { %628 = vrot.lane.b32.xlu0 %v627_v20, %s1422_s24  ;;  %v623_v46 = vsel %vm240_vm0, %v622_v21, %v1394_v15  ;;  %v176_v15 = vadd.f32 %v1775_v53, %v1792_v2 }
 0x56f   :  { %631 = vrot.lane.b32.xlu1 %v623_v46, %s1422_s24  ;;  %v624_v22 = vmul.f32 %v623_v46, %v617_v16 }
 0x5e0   :  { %v629_v23 = vpop.permute.xlu0 %628 }
 0x5e1   :  { %v630_v25 = vadd.f32 %v629_v23, %v624_v22  ;;  %v632_v28 = vpop.permute.xlu1 %631 }
 0x5e3   :  { %1395 = vtanh.f32 %v630_v25  ;;  %724 = vrot.lane.b32.xlu0 %v630_v25, %s1422_s24 }
 0x5ed   :  { %v1396_v26 = vpop.eup %1395 }
 0x5ee   :  { %v634_v29 = vmul.f32 %v1396_v26, %v632_v28 }
 0x5f0   :  { %1046 = vst [vmem:[%s1990_s4 + $0x18] sm:$0xff] %v634_v29  ;;  %705 = vmatmul.mubr.f32.vlgmr.msra.gmra.mrb[2].mxu0 %v634_v29 }
 0x5f1   :  { %1246 = vmatpush1.bf16.msra.mxu0 %v1537_v37  ;;  %803 = vmatprep.mubr.f32.mxu0 %v1421_v3 }
 0x5f2   :  { %1248 = vmatprep.subr.bf16.mxu0 %v1545_v40 }
 0x5f5   :  { %1250 = vmatpush1.bf16.msra.mxu0 %v1571_v50 }
 0x5f6   :  { %1252 = vmatprep.subr.bf16.mxu0 %v1576_v52 }
 0x5f9   :  { %1254 = vmatpush1.bf16.msra.mxu0 %v1601_v62 }
 0x5fa   :  { %1256 = vmatprep.subr.bf16.mxu0 %v1606_v0 }
 0x5fd   :  { %1258 = vmatpush1.bf16.msra.mxu0 %v1628_v10 }
 0x5fe   :  { %1260 = vmatprep.subr.bf16.mxu0 %v1630_v11 }
 0x601   :  { %1262 = vmatpush1.bf16.msra.mxu0 %v1646_v17 }
 0x602   :  { %1264 = vmatprep.subr.bf16.mxu0 %v1648_v18 }
 0x605   :  { %1266 = vmatpush1.bf16.msra.mxu0 %v1668_v24 }
 0x606   :  { %1268 = vmatprep.subr.bf16.mxu0 %v1676_v27 }
 0x609   :  { %1270 = vmatpush1.bf16.msra.mxu0 %v1691_v32 }
 0x60a   :  { %1272 = vmatprep.subr.bf16.mxu0 %v1700_v35 }
 0x60d   :  { %1274 = vmatpush1.bf16.msra.mxu0 %v1709_v38 }
 0x60e   :  { %1276 = vmatprep.subr.bf16.mxu0 %v1523_v31 }
 0x655   :  { %v725_v47 = vpop.permute.xlu0 %724 }
 0x6c3   :  { %v706_v34 = vpop.f32.mrb[2].mxu0 }
 0x6c4   :  { %v711_v36 = vadd.f32 %v706_v34, %v168_v30  ;;  %v708_v39 = vpop.f32.mrb[3].mxu0 }
 0x6c5   :  { %v712_v41 = vadd.f32 %v708_v39, %v170_v33 }
 0x6c6   :  { %v713_v42 = vmul.f32 0.5, %v711_v36 }
 0x6c7   :  { %v717_v43 = vmul.f32 0.5, %v712_v41 }
 0x6c8   :  { %1397 = vtanh.f32 %v713_v42 }
 0x6c9   :  { %v718_v44 = vsel %vm240_vm0, %v717_v43, %v712_v41 }
 0x6ca   :  { %1399 = vtanh.f32 %v718_v44 }
 0x6d2   :  { %v1398_v49 = vpop.eup %1397 }
 0x6d3   :  { %v715_v54 = vadd.f32 1.0, %v1398_v49 }
 0x6d4   :  { %v1400_v57 = vpop.eup %1399 }
 0x6d5   :  { %v716_v58 = vmul.f32 0.5, %v715_v54  ;;  %v720_v59 = vadd.f32 1.0, %v1400_v57 }
 0x6d7   :  { %v726_v4 = vmul.f32 %v725_v47, %v716_v58  ;;  %v721_v5 = vmul.f32 0.5, %v720_v59  ;;  %v186_v59 = vadd.f32 %v1784_v60, %v1788_v63  ;;  %v188_v47 = vadd.f32 %v1786_v61, %v1792_v2 }
 0x6d9   :  { %727 = vrot.lane.b32.xlu1 %v726_v4, %s1422_s24  ;;  %v722_v48 = vsel %vm240_vm0, %v721_v5, %v1400_v57 }
 0x6da   :  { %730 = vrot.lane.b32.xlu0 %v722_v48, %s1422_s24  ;;  %v723_v6 = vmul.f32 %v722_v48, %v716_v58 }
 0x74b   :  { %v728_v7 = vpop.permute.xlu1 %727 }
 0x74c   :  { %v729_v8 = vadd.f32 %v728_v7, %v723_v6  ;;  %v731_v12 = vpop.permute.xlu0 %730 }
 0x74e   :  { %1401 = vtanh.f32 %v729_v8  ;;  %823 = vrot.lane.b32.xlu1 %v729_v8, %s1422_s24 }
 0x758   :  { %v1402_v9 = vpop.eup %1401 }
 0x759   :  { %v733_v13 = vmul.f32 %v1402_v9, %v731_v12 }
 0x75b   :  { %1047 = vst [vmem:[%s1990_s4 + $0x20] sm:$0xff] %v733_v13  ;;  %804 = vmatmul.mubr.f32.vlgmr.msra.gmra.mrb[4].mxu0 %v733_v13 }
 0x75c   :  { %1278 = vmatpush1.bf16.msra.mxu0 %v1537_v37  ;;  %902 = vmatprep.mubr.f32.mxu0 %v1421_v3 }
 0x75d   :  { %1280 = vmatprep.subr.bf16.mxu0 %v1545_v40 }
 0x760   :  { %1282 = vmatpush1.bf16.msra.mxu0 %v1571_v50 }
 0x761   :  { %1284 = vmatprep.subr.bf16.mxu0 %v1576_v52 }
 0x764   :  { %1286 = vmatpush1.bf16.msra.mxu0 %v1601_v62 }
 0x765   :  { %1288 = vmatprep.subr.bf16.mxu0 %v1606_v0 }
 0x768   :  { %1290 = vmatpush1.bf16.msra.mxu0 %v1628_v10 }
 0x769   :  { %1292 = vmatprep.subr.bf16.mxu0 %v1630_v11 }
 0x76c   :  { %1294 = vmatpush1.bf16.msra.mxu0 %v1646_v17 }
 0x76d   :  { %1296 = vmatprep.subr.bf16.mxu0 %v1648_v18 }
 0x770   :  { %1298 = vmatpush1.bf16.msra.mxu0 %v1668_v24 }
 0x771   :  { %1300 = vmatprep.subr.bf16.mxu0 %v1676_v27 }
 0x774   :  { %1302 = vmatpush1.bf16.msra.mxu0 %v1691_v32 }
 0x775   :  { %1304 = vmatprep.subr.bf16.mxu0 %v1700_v35 }
 0x778   :  { %1306 = vmatpush1.bf16.msra.mxu0 %v1709_v38 }
 0x779   :  { %1308 = vmatprep.subr.bf16.mxu0 %v1523_v31 }
 0x7c0   :  { %v824_v51 = vpop.permute.xlu1 %823 }
 0x82e   :  { %v805_v16 = vpop.f32.mrb[4].mxu0 }
 0x82f   :  { %v810_v19 = vadd.f32 %v805_v16, %v174_v14  ;;  %v807_v45 = vpop.f32.mrb[5].mxu0 }
 0x830   :  { %v811_v20 = vadd.f32 %v807_v45, %v176_v15 }
 0x831   :  { %v812_v21 = vmul.f32 0.5, %v810_v19 }
 0x832   :  { %v816_v46 = vmul.f32 0.5, %v811_v20 }
 0x833   :  { %1403 = vtanh.f32 %v812_v21 }
 0x834   :  { %v817_v22 = vsel %vm240_vm0, %v816_v46, %v811_v20 }
 0x835   :  { %1405 = vtanh.f32 %v817_v22 }
 0x83d   :  { %v1404_v23 = vpop.eup %1403 }
 0x83e   :  { %v814_v25 = vadd.f32 1.0, %v1404_v23 }
 0x83f   :  { %v1406_v31 = vpop.eup %1405 }
 0x840   :  { %v815_v26 = vmul.f32 0.5, %v814_v25  ;;  %v819_v28 = vadd.f32 1.0, %v1406_v31 }
 0x842   :  { %v825_v29 = vmul.f32 %v824_v51, %v815_v26  ;;  %v820_v30 = vmul.f32 0.5, %v819_v28 }
 0x844   :  { %826 = vrot.lane.b32.xlu0 %v825_v29, %s1422_s24  ;;  %v821_v53 = vsel %vm240_vm0, %v820_v30, %v1406_v31 }
 0x845   :  { %829 = vrot.lane.b32.xlu1 %v821_v53, %s1422_s24  ;;  %v822_v33 = vmul.f32 %v821_v53, %v815_v26 }
 0x8b6   :  { %v827_v34 = vpop.permute.xlu0 %826 }
 0x8b7   :  { %v828_v36 = vadd.f32 %v827_v34, %v822_v33  ;;  %v830_v41 = vpop.permute.xlu1 %829 }
 0x8b9   :  { %1407 = vtanh.f32 %v828_v36  ;;  %922 = vrot.lane.b32.xlu0 %v828_v36, %s1422_s24 }
 0x8c3   :  { %v1408_v39 = vpop.eup %1407 }
 0x8c4   :  { %v832_v42 = vmul.f32 %v1408_v39, %v830_v41 }
 0x8c6   :  { %1048 = vst [vmem:[%s1990_s4 + $0x28] sm:$0xff] %v832_v42  ;;  %903 = vmatmul.mubr.f32.vlgmr.msra.gmra.mrb[6].mxu0 %v832_v42 }
 0x8c7   :  { %1310 = vmatpush1.bf16.msra.mxu0 %v1537_v37  ;;  %1001 = vmatprep.mubr.f32.mxu0 %v1421_v3  ;;  %v180_v3 = vadd.f32 %v1777_v55, %v1788_v63  ;;  %v182_v37 = vadd.f32 %v1779_v56, %v1792_v2 }
 0x8c8   :  { %1312 = vmatprep.subr.bf16.mxu0 %v1545_v40 }
 0x8cb   :  { %1314 = vmatpush1.bf16.msra.mxu0 %v1571_v50 }
 0x8cc   :  { %1316 = vmatprep.subr.bf16.mxu0 %v1576_v52 }
 0x8cf   :  { %1318 = vmatpush1.bf16.msra.mxu0 %v1601_v62 }
 0x8d0   :  { %1320 = vmatprep.subr.bf16.mxu0 %v1606_v0 }
 0x8d3   :  { %1322 = vmatpush1.bf16.msra.mxu0 %v1628_v10 }
 0x8d4   :  { %1324 = vmatprep.subr.bf16.mxu0 %v1630_v11 }
 0x8d7   :  { %1326 = vmatpush1.bf16.msra.mxu0 %v1646_v17 }
 0x8d8   :  { %1328 = vmatprep.subr.bf16.mxu0 %v1648_v18 }
 0x8db   :  { %1330 = vmatpush1.bf16.msra.mxu0 %v1668_v24 }
 0x8dc   :  { %1332 = vmatprep.subr.bf16.mxu0 %v1676_v27 }
 0x8df   :  { %1334 = vmatpush1.bf16.msra.mxu0 %v1691_v32 }
 0x8e0   :  { %1336 = vmatprep.subr.bf16.mxu0 %v1700_v35 }
 0x8e3   :  { %1338 = vmatpush1.bf16.msra.mxu0 %v1709_v38 }
 0x92b   :  { %v923_v35 = vpop.permute.xlu0 %922 }
 0x999   :  { %v904_v40 = vpop.f32.mrb[6].mxu0 }
 0x99a   :  { %v909_v50 = vadd.f32 %v904_v40, %v180_v3  ;;  %v906_v52 = vpop.f32.mrb[7].mxu0 }
 0x99b   :  { %v910_v62 = vadd.f32 %v906_v52, %v182_v37 }
 0x99c   :  { %v911_v0 = vmul.f32 0.5, %v909_v50 }
 0x99d   :  { %v915_v10 = vmul.f32 0.5, %v910_v62 }
 0x99e   :  { %1409 = vtanh.f32 %v911_v0 }
 0x99f   :  { %v916_v11 = vsel %vm240_vm0, %v915_v10, %v910_v62 }
 0x9a0   :  { %1411 = vtanh.f32 %v916_v11 }
 0x9a8   :  { %v1410_v17 = vpop.eup %1409 }
 0x9a9   :  { %v913_v18 = vadd.f32 1.0, %v1410_v17 }
 0x9aa   :  { %v1412_v24 = vpop.eup %1411 }
 0x9ab   :  { %v914_v27 = vmul.f32 0.5, %v913_v18  ;;  %v918_v32 = vadd.f32 1.0, %v1412_v24 }
 0x9ad   :  { %v924_v38 = vmul.f32 %v923_v35, %v914_v27  ;;  %v919_v55 = vmul.f32 0.5, %v918_v32 }
 0x9af   :  { %925 = vrot.lane.b32.xlu1 %v924_v38, %s1422_s24  ;;  %v920_v56 = vsel %vm240_vm0, %v919_v55, %v1412_v24 }
 0x9b0   :  { %928 = vrot.lane.b32.xlu0 %v920_v56, %s1422_s24  ;;  %v921_v43 = vmul.f32 %v920_v56, %v914_v27 }
 0xa21   :  { %v926_v44 = vpop.permute.xlu1 %925 }
 0xa22   :  { %v927_v49 = vadd.f32 %v926_v44, %v921_v43  ;;  %v929_v57 = vpop.permute.xlu0 %928 }
 0xa24   :  { %1413 = vtanh.f32 %v927_v49  ;;  %1021 = vrot.lane.b32.xlu1 %v927_v49, %s1422_s24 }
 0xa2e   :  { %v1414_v54 = vpop.eup %1413 }
 0xa2f   :  { %v931_v58 = vmul.f32 %v1414_v54, %v929_v57 }
 0xa31   :  { %1049 = vst [vmem:[%s1990_s4 + $0x30] sm:$0xff] %v931_v58  ;;  %1002 = vmatmul.mubr.f32.vlgmr.msra.gmra.mrb[8].mxu0 %v931_v58 }
 0xa96   :  { %v1022_v60 = vpop.permute.xlu1 %1021 }
 0xb04   :  { %v1003_v4 = vpop.f32.mrb[8].mxu0 }
 0xb05   :  { %v1008_v5 = vadd.f32 %v1003_v4, %v186_v59  ;;  %v1005_v48 = vpop.f32.mrb[9].mxu0 }
 0xb06   :  { %v1009_v6 = vadd.f32 %v1005_v48, %v188_v47 }
 0xb07   :  { %v1010_v7 = vmul.f32 0.5, %v1008_v5 }
 0xb08   :  { %v1014_v8 = vmul.f32 0.5, %v1009_v6 }
 0xb09   :  { %1415 = vtanh.f32 %v1010_v7 }
 0xb0a   :  { %v1015_v9 = vsel %vm240_vm0, %v1014_v8, %v1009_v6 }
 0xb0b   :  { %1417 = vtanh.f32 %v1015_v9 }
 0xb13   :  { %v1416_v12 = vpop.eup %1415 }
 0xb14   :  { %v1012_v13 = vadd.f32 1.0, %v1416_v12 }
 0xb15   :  { %v1418_v14 = vpop.eup %1417 }
 0xb16   :  { %v1013_v15 = vmul.f32 0.5, %v1012_v13  ;;  %v1017_v16 = vadd.f32 1.0, %v1418_v14 }
 0xb18   :  { %v1023_v63 = vmul.f32 %v1022_v60, %v1013_v15  ;;  %v1018_v19 = vmul.f32 0.5, %v1017_v16 }
 0xb1a   :  { %1024 = vrot.lane.b32.xlu0 %v1023_v63, %s1422_s24  ;;  %v1019_v61 = vsel %vm240_vm0, %v1018_v19, %v1418_v14 }
 0xb1b   :  { %1027 = vrot.lane.b32.xlu1 %v1019_v61, %s1422_s24  ;;  %v1020_v2 = vmul.f32 %v1019_v61, %v1013_v15 }
 0xb8c   :  { %v1025_v45 = vpop.permute.xlu0 %1024 }
 0xb8d   :  { %v1026_v20 = vadd.f32 %v1025_v45, %v1020_v2  ;;  %v1028_v46 = vpop.permute.xlu1 %1027 }
 0xb8f   :  { %1419 = vtanh.f32 %v1026_v20  ;;  %1035 = vst [vmem:[%s1991_s5] sm:$0xff] %v1026_v20 }
 0xb99   :  { %v1420_v21 = vpop.eup %1419 }
 0xb9a   :  { %v1030_v22 = vmul.f32 %v1420_v21, %v1028_v46 }
 0xb9c   :  { %1050 = vst [vmem:[%s1990_s4 + $0x38] sm:$0xff] %v1030_v22 }

</bundles_post_ra>
